<compile_context>
chip_gen: v7x
topology: tpu7x:2x2x1
jax: 0.10.0
libtpu: 0.0.40
codegen_flags: <defaults>
</compile_context>

<pallas_src>
import jax
import jax.numpy as jnp
from jax.experimental import pallas as pl
from jax.experimental.pallas import tpu as pltpu


def _round_up(n, m):
    return ((n + m - 1) // m) * m


def swiglu_kernel(x_ref, w12_ref, wp_ref, o_ref, acc_ref):
    k = pl.program_id(1)

    @pl.when(k == 0)
    def _():
        acc_ref[...] = jnp.zeros_like(acc_ref)

    th = wp_ref.shape[0]
    # Fused gate/value matmul: one MXU push, split columns in-register.
    y = jnp.dot(x_ref[...], w12_ref[...],
                preferred_element_type=jnp.float32)          # [tm, 2*th] f32
    a = y[:, :th]
    b = y[:, th:]
    h = (a * jax.nn.sigmoid(a)) * b                          # SiLU(a) * b, f32
    acc_ref[...] += jnp.dot(h.astype(wp_ref.dtype), wp_ref[...],
                            preferred_element_type=jnp.float32)

    @pl.when(k == pl.num_programs(1) - 1)
    def _():
        o_ref[...] = acc_ref[...].astype(o_ref.dtype)


def _choose_hidden_tile(hidden, d_model, d_out_pad, tm, itemsize, budget_bytes):
    """Largest 128-aligned divisor of `hidden` whose working set fits the budget."""
    def est(th):
        dbl = 2  # BlockSpec blocks are double-buffered by the pipeliner
        return (dbl * tm * d_model * itemsize          # x block
                + dbl * d_model * 2 * th * itemsize    # fused w12 block
                + dbl * th * d_out_pad * itemsize      # wp block
                + dbl * tm * d_out_pad * itemsize      # output block
                + tm * d_out_pad * 4)                  # f32 accumulator scratch

    cands = [t for t in range(hidden, 0, -1)
             if hidden % t == 0 and (t % 128 == 0 or t == hidden)]
    for t in cands:
        if est(t) <= budget_bytes:
            return t, est(t)
    t = cands[-1]
    return t, est(t)


def swiglu_prepare(w12, wproj, *, th, compute_dtype):
    """One-time weight preprocessing (hoist out of the per-step path in a model).

    Builds a fused [d_model, 2*hidden] slab whose hidden-tile k holds the gate
    columns a_k followed by the value columns b_k, plus a lane-padded proj
    weight [hidden, round_up(d_model, 128)].
    """
    hidden, d_model = wproj.shape[1], w12.shape[1]
    nk = hidden // th
    w1t = w12[:hidden, :].T.astype(compute_dtype)        # [d_model, hidden]
    w2t = w12[hidden:, :].T.astype(compute_dtype)        # [d_model, hidden]
    w12_fused = jnp.concatenate(
        [w1t.reshape(d_model, nk, th), w2t.reshape(d_model, nk, th)],
        axis=2).reshape(d_model, 2 * hidden)
    d_out_pad = _round_up(d_model, 128)
    wp = wproj.T.astype(compute_dtype)                   # [hidden, d_model]
    wp_pad = jnp.pad(wp, ((0, 0), (0, d_out_pad - d_model)))
    return w12_fused, wp_pad


def swiglu_pallas(x, w12, wproj, *, tm=256, compute_dtype=jnp.bfloat16,
                  vmem_budget_bytes=40 * 1024 * 1024):
    """x: [..., d_model]; w12: [2*hidden, d_model]; wproj: [d_model, hidden]."""
    d_model = x.shape[-1]
    hidden = wproj.shape[1]
    assert w12.shape == (2 * hidden, d_model)
    d_out_pad = _round_up(d_model, 128)

    lead = x.shape[:-1]
    x2 = x.reshape(-1, d_model).astype(compute_dtype)
    n_rows = x2.shape[0]
    tm = min(tm, _round_up(n_rows, 16))
    n_pad = _round_up(n_rows, tm)
    if n_pad != n_rows:
        x2 = jnp.pad(x2, ((0, n_pad - n_rows), (0, 0)))

    itemsize = jnp.dtype(compute_dtype).itemsize
    th, vmem_est = _choose_hidden_tile(hidden, d_model, d_out_pad, tm,
                                       itemsize, vmem_budget_bytes)
    nk = hidden // th

    # One-time weight layout prep (split/transpose/pad kept out of the kernel).
    w12_fused, wp_pad = swiglu_prepare(w12, wproj, th=th,
                                       compute_dtype=compute_dtype)

    vmem_limit = int(min(max(4 * vmem_est, 32 * 1024 * 1024), 64 * 1024 * 1024))

    out = pl.pallas_call(
        swiglu_kernel,
        out_shape=jax.ShapeDtypeStruct((n_pad, d_out_pad), x.dtype),
        grid_spec=pltpu.PrefetchScalarGridSpec(
            num_scalar_prefetch=0,
            grid=(n_pad // tm, nk),                      # rows parallel, hidden reduction
            in_specs=[
                pl.BlockSpec((tm, d_model), lambda i, k: (i, 0)),
                pl.BlockSpec((d_model, 2 * th), lambda i, k: (0, k)),
                pl.BlockSpec((th, d_out_pad), lambda i, k: (k, 0)),
            ],
            out_specs=pl.BlockSpec((tm, d_out_pad), lambda i, k: (i, 0)),
            scratch_shapes=[pltpu.VMEM((tm, d_out_pad), jnp.float32)],
        ),
        compiler_params=pltpu.CompilerParams(
            dimension_semantics=("parallel", "arbitrary"),
            vmem_limit_bytes=vmem_limit,
        ),
    )(x2, w12_fused, wp_pad)

    out = out[:n_rows, :d_model]
    return out.reshape(*lead, d_model)


def swiglu_ref(x, w12, wproj):
    hidden = wproj.shape[1]
    y = x @ w12.T
    a, b = y[..., :hidden], y[..., hidden:]
    return (jax.nn.silu(a) * b) @ wproj.T


if __name__ == "__main__":
    key = jax.random.PRNGKey(0)
    grid_h = grid_w = 30        # RepeatedTGA's 30x30 grid
    d_model = 48                # embed_dim default
    factor = 8                  # swiglu_factor default
    hidden = factor * d_model

    kx, kw12, kwp = jax.random.split(key, 3)
    x = jax.random.normal(kx, (grid_h, grid_w, d_model), dtype=jnp.float32)
    w12 = jax.random.uniform(kw12, (2 * hidden, d_model), jnp.float32,
                             minval=-1.0, maxval=1.0) / jnp.sqrt(d_model)
    wproj = jax.random.uniform(kwp, (d_model, hidden), jnp.float32,
                               minval=-1.0, maxval=1.0) / jnp.sqrt(hidden)

    # f32 path: tight tolerance against the pure-f32 reference.
    out_f32 = jax.block_until_ready(
        swiglu_pallas(x, w12, wproj, compute_dtype=jnp.float32))
    ref_f32 = swiglu_ref(x, w12, wproj)
    assert out_f32.shape == (grid_h, grid_w, d_model)
    assert jnp.allclose(out_f32, ref_f32, atol=1e-3, rtol=1e-3), "f32 mismatch"

    # bf16 path (default): compare against reference on bf16-quantized inputs.
    out_bf16 = jax.block_until_ready(swiglu_pallas(x, w12, wproj))
    ref_bf16 = swiglu_ref(x.astype(jnp.bfloat16).astype(jnp.float32),
                          w12.astype(jnp.bfloat16).astype(jnp.float32),
                          wproj.astype(jnp.bfloat16).astype(jnp.float32))
    assert out_bf16.shape == (grid_h, grid_w, d_model)
    max_err = float(jnp.max(jnp.abs(out_bf16 - ref_bf16)))
    assert max_err < 6e-2, f"bf16 mismatch (max abs err {max_err})"

    print("KERNEL_OK")
</pallas_src>

<mosaic_0001>
module attributes {stable_mosaic.version = 11 : i64} {
  func.func @swiglu_kernel(%arg0: i32, %arg1: i32, %arg2: memref<256x48xf32, #tpu.memory_space<vmem>>, %arg3: memref<48x768xf32, #tpu.memory_space<vmem>>, %arg4: memref<384x128xf32, #tpu.memory_space<vmem>>, %arg5: memref<256x128xf32, #tpu.memory_space<vmem>>, %arg6: memref<256x128xf32, #tpu.memory_space<vmem>>) attributes {dimension_semantics = [#tpu.dimension_semantics<parallel>, #tpu.dimension_semantics<arbitrary>], iteration_bounds = array<i64: 4, 1>, scalar_prefetch = 0 : i64, scratch_operands = 1 : i64, tpu.core_type = #tpu.core_type<tc>, window_params = [{transform_indices = @transform_0, window_bounds = array<i64: 256, 48>}, {transform_indices = @transform_1, window_bounds = array<i64: 48, 768>}, {transform_indices = @transform_2, window_bounds = array<i64: 384, 128>}, {transform_indices = @transform_3, window_bounds = array<i64: 256, 128>}]} {
    %c0_i32 = arith.constant 0 : i32
    %0 = arith.cmpi eq, %arg1, %c0_i32 : i32
    %1 = arith.extui %0 : i1 to i32
    %c0_i32_0 = arith.constant 0 : i32
    %2 = arith.cmpi ne, %1, %c0_i32_0 : i32
    scf.if %2 {
      %cst_14 = arith.constant 0.000000e+00 : f32
      %23 = vector.broadcast %cst_14 : f32 to vector<256x128xf32>
      %c0_15 = arith.constant 0 : index
      %c0_16 = arith.constant 0 : index
      %24 = vector.load %arg6[%c0_15, %c0_16] : memref<256x128xf32, #tpu.memory_space<vmem>>, vector<256x128xf32>
      tpu.vector_store %arg6[%c0_15, %c0_16], %23 {strides = array<i32>} : memref<256x128xf32, #tpu.memory_space<vmem>>, vector<256x128xf32>,
    } else {
    }
    %c0 = arith.constant 0 : index
    %c0_1 = arith.constant 0 : index
    %3 = vector.load %arg2[%c0, %c0_1] : memref<256x48xf32, #tpu.memory_space<vmem>>, vector<256x48xf32>
    %c0_2 = arith.constant 0 : index
    %c0_3 = arith.constant 0 : index
    %4 = vector.load %arg3[%c0_2, %c0_3] : memref<48x768xf32, #tpu.memory_space<vmem>>, vector<48x768xf32>
    %cst = arith.constant dense<0.000000e+00> : vector<256x768xf32>
    %5 = tpu.matmul %3, %4, %cst {dimension_numbers = #tpu.dot_dimension_numbers<[1], [0], [0], [1], [0, 0, 1, 1], [], []>} : vector<256x48xf32>, vector<48x768xf32>, vector<256x768xf32> -> vector<256x768xf32>
    %6 = vector.extract_strided_slice %5 {offsets = [0, 0], sizes = [256, 384], strides = [1, 1]} : vector<256x768xf32> to vector<256x384xf32>
    %7 = vector.extract_strided_slice %5 {offsets = [0, 384], sizes = [256, 384], strides = [1, 1]} : vector<256x768xf32> to vector<256x384xf32>
    %8 = arith.negf %6 : vector<256x384xf32>
    %9 = math.exp %8 : vector<256x384xf32>
    %cst_4 = arith.constant 1.000000e+00 : f32
    %10 = vector.broadcast %cst_4 : f32 to vector<256x384xf32>
    %11 = arith.addf %10, %9 : vector<256x384xf32>
    %12 = arith.divf %10, %11 : vector<256x384xf32>
    %13 = arith.mulf %6, %12 : vector<256x384xf32>
    %14 = arith.mulf %13, %7 : vector<256x384xf32>
    %c0_5 = arith.constant 0 : index
    %c0_6 = arith.constant 0 : index
    %15 = vector.load %arg6[%c0_5, %c0_6] : memref<256x128xf32, #tpu.memory_space<vmem>>, vector<256x128xf32>
    %c0_7 = arith.constant 0 : index
    %c0_8 = arith.constant 0 : index
    %16 = vector.load %arg4[%c0_7, %c0_8] : memref<384x128xf32, #tpu.memory_space<vmem>>, vector<384x128xf32>
    %cst_9 = arith.constant dense<0.000000e+00> : vector<256x128xf32>
    %17 = tpu.matmul %14, %16, %cst_9 {dimension_numbers = #tpu.dot_dimension_numbers<[1], [0], [0], [1], [0, 0, 1, 1], [], []>} : vector<256x384xf32>, vector<384x128xf32>, vector<256x128xf32> -> vector<256x128xf32>
    %18 = arith.addf %15, %17 : vector<256x128xf32>
    %c0_10 = arith.constant 0 : index
    %c0_11 = arith.constant 0 : index
    %19 = vector.load %arg6[%c0_10, %c0_11] : memref<256x128xf32, #tpu.memory_space<vmem>>, vector<256x128xf32>
    tpu.vector_store %arg6[%c0_10, %c0_11], %18 {strides = array<i32>} : memref<256x128xf32, #tpu.memory_space<vmem>>, vector<256x128xf32>,
    %c0_i32_12 = arith.constant 0 : i32
    %20 = arith.cmpi eq, %arg1, %c0_i32_12 : i32
    %21 = arith.extui %20 : i1 to i32
    %c0_i32_13 = arith.constant 0 : i32
    %22 = arith.cmpi ne, %21, %c0_i32_13 : i32
    scf.if %22 {
      %c0_14 = arith.constant 0 : index
      %c0_15 = arith.constant 0 : index
      %23 = vector.load %arg6[%c0_14, %c0_15] : memref<256x128xf32, #tpu.memory_space<vmem>>, vector<256x128xf32>
      %c0_16 = arith.constant 0 : index
      %c0_17 = arith.constant 0 : index
      %24 = vector.load %arg5[%c0_16, %c0_17] : memref<256x128xf32, #tpu.memory_space<vmem>>, vector<256x128xf32>
      tpu.vector_store %arg5[%c0_16, %c0_17], %23 {strides = array<i32>} : memref<256x128xf32, #tpu.memory_space<vmem>>, vector<256x128xf32>,
    } else {
    }
    return
  }
  func.func @transform_0(%arg0: i32, %arg1: i32) -> (i32, i32) {
    %c0_i32 = arith.constant 0 : i32
    %c0_i32_0 = arith.constant 0 : i32
    return %arg0, %c0_i32 : i32, i32
  }
  func.func @transform_1(%arg0: i32, %arg1: i32) -> (i32, i32) {
    %c0_i32 = arith.constant 0 : i32
    %c0_i32_0 = arith.constant 0 : i32
    return %c0_i32, %arg1 : i32, i32
  }
  func.func @transform_2(%arg0: i32, %arg1: i32) -> (i32, i32) {
    %c0_i32 = arith.constant 0 : i32
    %c0_i32_0 = arith.constant 0 : i32
    return %arg1, %c0_i32 : i32, i32
  }
  func.func @transform_3(%arg0: i32, %arg1: i32) -> (i32, i32) {
    %c0_i32 = arith.constant 0 : i32
    %c0_i32_0 = arith.constant 0 : i32
    return %arg0, %c0_i32 : i32, i32
  }
}

</mosaic_0001>

<bundles_post_ra>
// kernel: tpu_custom_call.1
= control target key start
LH: loop header
LB: loop body
LE: loop exit
PB: predicated region body
PF: predicated region fallthrough
CT: control target
= control target key end

     0   :  { %8 = vsyncpa [#allocation4], 0  ;;  %s5231_s0 = inlined_call_operand.vmem [shape: f32[1024,48], index: 0, kind: input, shape index: {}]   ;;  %s5232_s1 = inlined_call_operand.vmem [shape: f32[48,768], index: 1, kind: input, shape index: {}]   ;;  %s5233_s2 = inlined_call_operand.vmem [shape: f32[384,128], index: 2, kind: input, shape index: {}]   ;;  %s5234_s3 = inlined_call_operand.hbm [shape: f32[1024,128], index: 3, kind: output, shape index: {}]  }
   0x1   :  { %10 = vsyncpa [#allocation4 + $0x1], 0  ;;  %s3749_s12 = smov 0   ;;  %s3751_s13 = smov 0  }
   0x2   :  { %s3753_s14 = smov 0   ;;  %s3755_s15 = smov 0  }
   0x3   :  { %s3757_s16 = smov 0   ;;  %s3759_s17 = smov 0  }
   0x4 LB: > { %s2743_s18 = sadd.s32 4294967295, %s3722_s17   ;;  %s2744_s19 = sadd.s32 4294967294, %s3722_s17   ;;  %s3722_s17 = sphi %s3759_s17, %s16_s17   ;;  %s3718_s16 = sphi %s3757_s16, %s5443_s16   ;;  %s3714_s15 = sphi %s3755_s15, %s5442_s15   ;;  %s3710_s14 = sphi %s3753_s14, %s5441_s14   ;;  %s3706_s13 = sphi %s3751_s13, %s5440_s13   ;;  %s3702_s12 = sphi %s3749_s12, %s5439_s12  }
   0x5   : > { %s28_s20 = sadd.s32 1, %s3718_s16  ;;  %s113_s21 = sadd.s32 1, %s3710_s14 }
   0x6   : > { %p30_p0 = scmp.ge.s32.totalorder %s28_s20, 4  ;;  %p123_p1 = scmp.ne.s32.totalorder %s3710_s14, %s3706_s13 }
   0x7   : > { %p124_p2 = scmp.eq.s32.totalorder %s2743_s18, 3  ;;  %p129_p3 = scmp.ne.s32.totalorder %s3706_s13, %s3702_s12 }
   0x8   : > { %s5445_s20 = smov (%p30_p0, %s28_s20), 0  ;;  %p130_p5 = scmp.eq.s32.totalorder %s2744_s19, 3 }
   0x9   : > { %p3789_p4 = por %p124_p2, %p123_p1  ;;  %s110_s23 = ssub.s32 %s3718_s16, %s5445_s20 }
   0xa   : > { %p2749_p6 = scmp.ge.s32.totalorder %s3722_s17, 1  ;;  %p111_p7 = scmp.eq.s32.totalorder %s110_s23, 0 }
   0xb   : > { %p3796_p8 = por %p130_p5, %p129_p3  ;;  %p175_p9 = scmp.lt.s32.totalorder %s3722_s17, 5 }
   0xc   : > { %s3802_s25 = scalar_select %p111_p7, %s3710_s14, %s113_s21  }
   0xd   : > { %p176_p10 = pnand %p2749_p6, %p175_p9 }
   0xf   : > { %179 = sbr.rel (%p176_p10) target bundleno = 704 (0x2c0), region = 32 }
  0x16   : > { %v297_v0 = vld [vmem:[%s5232_s1 + $0x8] sm:$0xff]  ;;  %v303_v1 = vld [vmem:[%s5232_s1 + $0x38] sm:$0xff]  ;;  %v296_v2 = vld [vmem:[%s5232_s1] sm:$0xff]  ;;  %s2751_s5 = sshll.u32 %s3714_s15, 5  ;;  %v3724_v7 = vmov 0.0   ;;  %vm332_vm0 = vcmask 392192  }
  0x17   : > { %v3079_v3 = vpack.c.bf16 %v303_v1, %v297_v0  ;;  %v302_v4 = vld [vmem:[%s5232_s1 + $0x30] sm:$0xff]  ;;  %v309_v5 = vld [vmem:[%s5232_s1 + $0x68] sm:$0xff]  ;;  %v315_v6 = vld [vmem:[%s5232_s1 + $0x98] sm:$0xff]  ;;  %493 = vmatprep.mubr.f32.mxu0 %v3724_v7  ;;  %637 = vmatprep.mubr.f32.mxu1 %v3724_v7  ;;  %p210_p11 = scmp.lt.s32.totalorder %s2751_s5, 127  ;;  %s206_s6 = sand.u32 1, %s3706_s13  }
  0x18   : > { %v3081_v8 = vpack.c.bf16 %v302_v4, %v296_v2  ;;  %v3083_v9 = vpack.c.bf16 %v315_v6, %v309_v5  ;;  %v308_v10 = vld [vmem:[%s5232_s1 + $0x60] sm:$0xff]  ;;  %v314_v11 = vld [vmem:[%s5232_s1 + $0x90] sm:$0xff]  ;;  %v321_v12 = vld [vmem:[%s5232_s1 + $0xc8] sm:$0xff]  ;;  %s2750_s7 = sshll.u32 %s206_s6, 8  ;;  %s2950_s9 = sshll.u32 %s3714_s15, 12 }
  0x19   : > { %3080 = vmatprep.subr.bf16.mxu0 %v3079_v3  ;;  %3195 = vmatprep.subr.bf16.mxu1 %v3079_v3  ;;  %v327_v13 = vld [vmem:[%s5232_s1 + $0xf8] sm:$0xff]  ;;  %s5447_s5 = smov (!%p210_p11, %s2751_s5), 127  ;;  %v3085_v14 = vpack.c.bf16 %v314_v11, %v308_v10  ;;  %v320_v16 = vld [vmem:[%s5232_s1 + $0xc0] sm:$0xff]  ;;  %v326_v17 = vld [vmem:[%s5232_s1 + $0xf0] sm:$0xff]  ;;  %s5140_s8 = scalar_lea.vmem [#allocation3], %s2750_s7 }
  0x1a   : > { %3082 = vmatpush1.bf16.msra.mxu0 %v3081_v8  ;;  %3198 = vmatpush1.bf16.msra.mxu1 %v3081_v8  ;;  %v3087_v15 = vpack.c.bf16 %v327_v13, %v321_v12  ;;  %v301_v18 = vld [vmem:[%s5232_s1 + $0x28] sm:$0xff]  ;;  %s2752_s10 = sshll.u32 %s5447_s5, 3  ;;  %v307_v19 = vld [vmem:[%s5232_s1 + $0x58] sm:$0xff]  ;;  %v3089_v22 = vpack.c.bf16 %v326_v17, %v320_v16  ;;  %v300_v24 = vld [vmem:[%s5232_s1 + $0x20] sm:$0xff]  ;;  %s2643_s11 = sshll.u32 %s5140_s8, 4  ;;  %s5179_s11 = int_to_ptr.vmem [resolvable:$true] %s2643_s11 }
  0x1b   : > { %3084 = vmatprep.subr.bf16.mxu0 %v3083_v9  ;;  %3196 = vmatprep.subr.bf16.mxu1 %v3083_v9  ;;  %v299_v20 = vld [vmem:[%s5232_s1 + $0x18] sm:$0xff]  ;;  %v305_v21 = vld [vmem:[%s5232_s1 + $0x48] sm:$0xff]  ;;  %s3858_s5 = scalar_lea.vmem %s5231_s0, %s2752_s10  ;;  %v3103_v23 = vpack.c.bf16 %v307_v19, %v301_v18  ;;  %v306_v25 = vld [vmem:[%s5232_s1 + $0x50] sm:$0xff]  ;;  %v3725_v19 = vmov 0.0|0.0   ;;  %s5177_s18 = scalar_lea.hbm %s5234_s3, %s2950_s9 }
  0x1c   : > { %v3091_v26 = vpack.c.bf16 %v305_v21, %v299_v20  ;;  %v298_v27 = vld [vmem:[%s5232_s1 + $0x10] sm:$0xff]  ;;  %v304_v28 = vld [vmem:[%s5232_s1 + $0x40] sm:$0xff]  ;;  %v311_v29 = vld [vmem:[%s5232_s1 + $0x78] sm:$0xff]  ;;  %v3105_v33 = vpack.c.bf16 %v306_v25, %v300_v24  ;;  %s5185_s15 = scalar_lea.sflag [#allocation4], %s206_s6  ;;  %s3644_s19 = scalar_lea.vmem %s5179_s11, 4096 }
  0x1d   : > { %v317_v30 = vld [vmem:[%s5232_s1 + $0xa8] sm:$0xff]  ;;  %v3879_v31 = vld [vmem:[%s3858_s5] sm:$0xff]  ;;  %v3093_v34 = vpack.c.bf16 %v304_v28, %v298_v27  ;;  %v310_v35 = vld [vmem:[%s5232_s1 + $0x70] sm:$0xff]  ;;  %p3645_p12 = scmp.ne.s32.totalorder %s5179_s11, %s3644_s19  ;;  %s3726_s21 = smov [#allocation3]  }
  0x1e   : > { %3086 = vmatpush1.bf16.msra.mxu0 %v3085_v14  ;;  %3199 = vmatpush1.bf16.msra.mxu1 %v3085_v14  ;;  %v3882_v32 = vld [vmem:[%s3858_s5 + $0xc0] sm:$0xff]  ;;  %v3095_v36 = vpack.c.bf16 %v317_v30, %v311_v29  ;;  %v323_v38 = vld [vmem:[%s5232_s1 + $0xd8] sm:$0xff]  ;;  %v329_v39 = vld [vmem:[%s5232_s1 + $0x108] sm:$0xff]  ;;  %s3648_s23 = sshll.u32 %s3726_s21, 4  ;;  %s3649_s23 = int_to_ptr.vmem [resolvable:$false] %s3648_s23 }
  0x1f   : > { %3088 = vmatprep.subr.bf16.mxu0 %v3087_v15  ;;  %3197 = vmatprep.subr.bf16.mxu1 %v3087_v15  ;;  %v316_v37 = vld [vmem:[%s5232_s1 + $0xa0] sm:$0xff]  ;;  %v313_v40 = vld [vmem:[%s5232_s1 + $0x88] sm:$0xff]  ;;  %v319_v41 = vld [vmem:[%s5232_s1 + $0xb8] sm:$0xff]  ;;  %v3099_v49 = vpack.c.bf16 %v329_v39, %v323_v38  ;;  %p3646_p13 = pnand %p3645_p12, %p3789_p4  ;;  %s3650_s26 = scalar_lea.vmem %s3649_s23, 8192 }
  0x20   : > { %v312_v42 = vld [vmem:[%s5232_s1 + $0x80] sm:$0xff]  ;;  %v3911_v43 = vld [vmem:[%s3858_s5 + $0x8] sm:$0xff]  ;;  %v3107_v45 = vpack.c.bf16 %v319_v41, %v313_v40  ;;  %v318_v46 = vld [vmem:[%s5232_s1 + $0xb0] sm:$0xff]  ;;  %v3097_v47 = vpack.c.bf16 %v316_v37, %v310_v35  ;;  %p3651_p1 = scmp.lt.s32.totalorder %s5179_s11, %s3649_s23  ;;  %p3652_p2 = scmp.lt.s32.totalorder %s3650_s26, %s3644_s19 }
  0x21   : > { %v3914_v44 = vld [vmem:[%s3858_s5 + $0xc8] sm:$0xff]  ;;  %v3109_v48 = vpack.c.bf16 %v318_v46, %v312_v42  ;;  %v322_v50 = vld [vmem:[%s5232_s1 + $0xd0] sm:$0xff]  ;;  %v328_v51 = vld [vmem:[%s5232_s1 + $0x100] sm:$0xff]  ;;  %p3647_p0 = pneg %p3646_p13 }
  0x22   : > { %3090 = vmatpush1.bf16.msra.mxu0 %v3089_v22  ;;  %3200 = vmatpush1.bf16.msra.mxu1 %v3089_v22  ;;  %v325_v52 = vld [vmem:[%s5232_s1 + $0xe8] sm:$0xff]  ;;  %v331_v53 = vld [vmem:[%s5232_s1 + $0x118] sm:$0xff]  ;;  %v324_v54 = vld [vmem:[%s5232_s1 + $0xe0] sm:$0xff]  ;;  %v3101_v59 = vpack.c.bf16 %v328_v51, %v322_v50  ;;  %p3653_p3 = por %p3652_p2, %p3651_p1 }
  0x23   : > { %3104 = vmatprep.subr.bf16.mxu0 %v3103_v23  ;;  %3092 = vmatprep.subr.bf16.mxu1 %v3091_v26  ;;  %v3942_v55 = vld [vmem:[%s3858_s5 + $0x10] sm:$0xff]  ;;  %v3111_v57 = vpack.c.bf16 %v331_v53, %v325_v52  ;;  %v3957_v61 = vld [vmem:[%s3858_s5 + $0x18] sm:$0xff]  ;;  %v3969_v63 = vld [vmem:[%s3858_s5 + $0x20] sm:$0xff] }
  0x24   : > { %v3945_v56 = vld [vmem:[%s3858_s5 + $0xd0] sm:$0xff]  ;;  %v3960_v62 = vld [vmem:[%s3858_s5 + $0xd8] sm:$0xff]  ;;  %v3972_v0 = vld [vmem:[%s3858_s5 + $0xe0] sm:$0xff]  ;;  %p3654_p5 = pnand %p3653_p3, %p3647_p0 }
  0x25   : > { %2753 = vmatmul.mubr.msk.f32.vlgmr.msra.gmra.mrb[0].mxu0 %vm332_vm0, %v3879_v31  ;;  %2777 = vmatmul.mubr.msk.f32.vlgmr.msra.gmra.mrb[0].mxu1 %vm332_vm0, %v3882_v32  ;;  %v330_v58 = vld [vmem:[%s5232_s1 + $0x110] sm:$0xff]  ;;  %v3981_v1 = vld [vmem:[%s3858_s5 + $0x28] sm:$0xff]  ;;  %v4005_v5 = vld [vmem:[%s3858_s5 + $0x38] sm:$0xff] }
  0x26   : > { %3106 = vmatpush1.bf16.msra.mxu0 %v3105_v33  ;;  %499 = vmatprep.mubr.f32.mxu0 %v3724_v7  ;;  %v3113_v60 = vpack.c.bf16 %v330_v58, %v324_v54  ;;  %v3984_v2 = vld [vmem:[%s3858_s5 + $0xe8] sm:$0xff]  ;;  %v3993_v3 = vld [vmem:[%s3858_s5 + $0x30] sm:$0xff]  ;;  %v4008_v6 = vld [vmem:[%s3858_s5 + $0xf8] sm:$0xff] }
  0x27   : > { %643 = vmatprep.mubr.f32.mxu1 %v3724_v7  ;;  %3094 = vmatpush1.bf16.msra.mxu1 %v3093_v34  ;;  %v3996_v4 = vld [vmem:[%s3858_s5 + $0xf0] sm:$0xff]  ;;  %v4017_v8 = vld [vmem:[%s3858_s5 + $0x40] sm:$0xff]  ;;  %v4026_v9 = vld [vmem:[%s3858_s5 + $0x48] sm:$0xff] }
  0x28   : > { %3096 = vmatprep.subr.bf16.mxu1 %v3095_v36  ;;  %3108 = vmatprep.subr.bf16.mxu0 %v3107_v45  ;;  %v4035_v10 = vld [vmem:[%s3858_s5 + $0x50] sm:$0xff]  ;;  %v4044_v11 = vld [vmem:[%s3858_s5 + $0x58] sm:$0xff]  ;;  %v4053_v12 = vld [vmem:[%s3858_s5 + $0x60] sm:$0xff] }
  0x29   : > { %2754 = vmatmul.mubr.msk.f32.gmra.mrb[2].mxu0 %vm332_vm0, %v3911_v43  ;;  %2778 = vmatmul.mubr.msk.f32.gmra.mrb[2].mxu1 %vm332_vm0, %v3914_v44  ;;  %v4062_v13 = vld [vmem:[%s3858_s5 + $0x68] sm:$0xff]  ;;  %v4071_v14 = vld [vmem:[%s3858_s5 + $0x70] sm:$0xff]  ;;  %v2000_v15 = vld [vmem:[%s5233_s2] sm:$0xff] }
  0x2a   : > { %505 = vmatprep.mubr.f32.mxu0 %v3724_v7  ;;  %649 = vmatprep.mubr.f32.mxu1 %v3724_v7  ;;  %v2001_v16 = vld [vmem:[%s5233_s2 + $0x8] sm:$0xff]  ;;  %v4086_v17 = vld [vmem:[%s3858_s5 + $0x78] sm:$0xff]  ;;  %v4096_v20 = vld [vmem:[%s3858_s5 + $0x80] sm:$0xff] }
  0x2b   : > { %3098 = vmatpush1.bf16.msra.mxu1 %v3097_v47  ;;  %3110 = vmatpush1.bf16.msra.mxu0 %v3109_v48  ;;  %v3116_v18 = vpack.c.bf16 %v2001_v16, %v2000_v15  ;;  %v2002_v21 = vld [vmem:[%s5233_s2 + $0x10] sm:$0xff]  ;;  %v2003_v22 = vld [vmem:[%s5233_s2 + $0x18] sm:$0xff]  ;;  %v4112_v23 = vld [vmem:[%s3858_s5 + $0x88] sm:$0xff] }
  0x2c   : > { %3100 = vmatprep.subr.bf16.mxu1 %v3099_v49  ;;  %3112 = vmatprep.subr.bf16.mxu0 %v3111_v57  ;;  %v3119_v24 = vpack.c.bf16 %v2003_v22, %v2002_v21  ;;  %v4121_v25 = vld [vmem:[%s3858_s5 + $0x90] sm:$0xff]  ;;  %v2004_v26 = vld [vmem:[%s5233_s2 + $0x20] sm:$0xff]  ;;  %v2005_v27 = vld [vmem:[%s5233_s2 + $0x28] sm:$0xff] }
  0x2d   : > { %2755 = vmatmul.mubr.msk.f32.gmra.mrb[4].mxu0 %vm332_vm0, %v3942_v55  ;;  %2779 = vmatmul.mubr.msk.f32.gmra.mrb[4].mxu1 %vm332_vm0, %v3945_v56  ;;  %v4137_v28 = vld [vmem:[%s3858_s5 + $0x98] sm:$0xff]  ;;  %v3122_v29 = vpack.c.bf16 %v2005_v27, %v2004_v26  ;;  %v4146_v30 = vld [vmem:[%s3858_s5 + $0xa0] sm:$0xff]  ;;  %v2006_v33 = vld [vmem:[%s5233_s2 + $0x30] sm:$0xff] }
  0x2e   : > { %511 = vmatprep.mubr.f32.mxu0 %v3724_v7  ;;  %655 = vmatprep.mubr.f32.mxu1 %v3724_v7  ;;  %v2007_v34 = vld [vmem:[%s5233_s2 + $0x38] sm:$0xff]  ;;  %v4162_v35 = vld [vmem:[%s3858_s5 + $0xa8] sm:$0xff]  ;;  %v4171_v37 = vld [vmem:[%s3858_s5 + $0xb0] sm:$0xff] }
  0x2f   : > { %3102 = vmatpush1.bf16.msra.mxu1 %v3101_v59  ;;  %3114 = vmatpush1.bf16.msra.mxu0 %v3113_v60  ;;  %v3125_v36 = vpack.c.bf16 %v2007_v34, %v2006_v33  ;;  %v4181_v38 = vld [vmem:[%s3858_s5 + $0xb8] sm:$0xff]  ;;  %v2009_v39 = vld [vmem:[%s5233_s2 + $0x48] sm:$0xff]  ;;  %v2010_v41 = vld [vmem:[%s5233_s2 + $0x50] sm:$0xff] }
  0x30   : > { %3115 = vmatprep.subr.bf16.mxu1 %v3725_v19  ;;  %v2011_v42 = vld [vmem:[%s5233_s2 + $0x58] sm:$0xff]  ;;  %v2012_v45 = vld [vmem:[%s5233_s2 + $0x60] sm:$0xff]  ;;  %v2013_v46 = vld [vmem:[%s5233_s2 + $0x68] sm:$0xff] }
  0x31   : > { %2756 = vmatmul.mubr.msk.f32.gmra.mrb[6].mxu0 %vm332_vm0, %v3957_v61  ;;  %2780 = vmatmul.mubr.msk.f32.gmra.mrb[6].mxu1 %vm332_vm0, %v3960_v62  ;;  %v3134_v47 = vpack.c.bf16 %v2013_v46, %v2012_v45  ;;  %v2014_v48 = vld [vmem:[%s5233_s2 + $0x70] sm:$0xff]  ;;  %v2015_v49 = vld [vmem:[%s5233_s2 + $0x78] sm:$0xff]  ;;  %v2032_v51 = vld [vmem:[%s5233_s2 + $0x100] sm:$0xff] }
  0x32   : > { %517 = vmatprep.mubr.f32.mxu0 %v3724_v7  ;;  %661 = vmatprep.mubr.f32.mxu1 %v3724_v7  ;;  %v3137_v50 = vpack.c.bf16 %v2015_v49, %v2014_v48  ;;  %v2033_v52 = vld [vmem:[%s5233_s2 + $0x108] sm:$0xff]  ;;  %v2016_v54 = vld [vmem:[%s5233_s2 + $0x80] sm:$0xff]  ;;  %v2018_v58 = vld [vmem:[%s5233_s2 + $0x90] sm:$0xff] }
  0x33   : > { %v3163_v53 = vpack.c.bf16 %v2033_v52, %v2032_v51  ;;  %v2019_v59 = vld [vmem:[%s5233_s2 + $0x98] sm:$0xff]  ;;  %v2038_v27 = vld [vmem:[%s5233_s2 + $0x130] sm:$0xff] }
  0x34   : > { %v3143_v60 = vpack.c.bf16 %v2019_v59, %v2018_v58  ;;  %v2042_v58 = vld [vmem:[%s5233_s2 + $0x150] sm:$0xff] }
  0x35   : > { %2757 = vmatmul.mubr.msk.f32.gmra.mrb[8].mxu0 %vm332_vm0, %v3969_v63  ;;  %2781 = vmatmul.mubr.msk.f32.gmra.mrb[8].mxu1 %vm332_vm0, %v3972_v0 }
  0x36   : > { %523 = vmatprep.mubr.f32.mxu0 %v3724_v7  ;;  %667 = vmatprep.mubr.f32.mxu1 %v3724_v7 }
  0x37   : > { %3164 = vmatprep.subr.bf16.mxu0 %v3163_v53 }
  0x39   : > { %2758 = vmatmul.mubr.msk.f32.gmra.mrb[10].mxu0 %vm332_vm0, %v3981_v1  ;;  %2782 = vmatmul.mubr.msk.f32.gmra.mrb[10].mxu1 %vm332_vm0, %v3984_v2 }
  0x3a   : > { %529 = vmatprep.mubr.f32.mxu0 %v3724_v7  ;;  %673 = vmatprep.mubr.f32.mxu1 %v3724_v7 }
  0x3d   : > { %2759 = vmatmul.mubr.msk.f32.gmra.mrb[12].mxu0 %vm332_vm0, %v3993_v3  ;;  %2783 = vmatmul.mubr.msk.f32.gmra.mrb[12].mxu1 %vm332_vm0, %v3996_v4 }
  0x3e   : > { %535 = vmatprep.mubr.f32.mxu0 %v3724_v7  ;;  %679 = vmatprep.mubr.f32.mxu1 %v3724_v7 }
  0x41   : > { %2760 = vmatmul.mubr.msk.f32.gmra.mrb[14].mxu0 %vm332_vm0, %v4005_v5  ;;  %2784 = vmatmul.mubr.msk.f32.gmra.mrb[14].mxu1 %vm332_vm0, %v4008_v6 }
  0x42   : > { %541 = vmatprep.mubr.f32.mxu0 %v3724_v7  ;;  %750 = vmatprep.mubr.f32.mxu1 %v3724_v7 }
  0x45   : > { %2761 = vmatmul.mubr.msk.f32.gmra.mrb[16].mxu0 %vm332_vm0, %v4017_v8  ;;  %2785 = vmatmul.mubr.msk.f32.vlgmr.msra.gmra.mrb[16].mxu1 %vm332_vm0, %v3879_v31 }
  0x46   : > { %547 = vmatprep.mubr.f32.mxu0 %v3724_v7  ;;  %756 = vmatprep.mubr.f32.mxu1 %v3724_v7 }
  0x47   : > { %3117 = vmatpush1.bf16.msra.mxu1 %v3116_v18 }
  0x48   : > { %3118 = vmatprep.subr.bf16.mxu1 %v3725_v19 }
  0x49   : > { %2762 = vmatmul.mubr.msk.f32.gmra.mrb[18].mxu0 %vm332_vm0, %v4026_v9  ;;  %2786 = vmatmul.mubr.msk.f32.gmra.mrb[18].mxu1 %vm332_vm0, %v3911_v43 }
  0x4a   : > { %553 = vmatprep.mubr.f32.mxu0 %v3724_v7  ;;  %762 = vmatprep.mubr.f32.mxu1 %v3724_v7 }
  0x4b   : > { %3120 = vmatpush1.bf16.msra.mxu1 %v3119_v24 }
  0x4c   : > { %3121 = vmatprep.subr.bf16.mxu1 %v3725_v19 }
  0x4d   : > { %2763 = vmatmul.mubr.msk.f32.gmra.mrb[20].mxu0 %vm332_vm0, %v4035_v10  ;;  %2787 = vmatmul.mubr.msk.f32.gmra.mrb[20].mxu1 %vm332_vm0, %v3942_v55 }
  0x4e   : > { %559 = vmatprep.mubr.f32.mxu0 %v3724_v7  ;;  %768 = vmatprep.mubr.f32.mxu1 %v3724_v7 }
  0x4f   : > { %3123 = vmatpush1.bf16.msra.mxu1 %v3122_v29 }
  0x50   : > { %3124 = vmatprep.subr.bf16.mxu1 %v3725_v19 }
  0x51   : > { %2764 = vmatmul.mubr.msk.f32.gmra.mrb[22].mxu0 %vm332_vm0, %v4044_v11  ;;  %2788 = vmatmul.mubr.msk.f32.gmra.mrb[22].mxu1 %vm332_vm0, %v3957_v61 }
  0x52   : > { %565 = vmatprep.mubr.f32.mxu0 %v3724_v7  ;;  %774 = vmatprep.mubr.f32.mxu1 %v3724_v7 }
  0x53   : > { %3126 = vmatpush1.bf16.msra.mxu1 %v3125_v36  ;;  %v2026_v36 = vld [vmem:[%s5233_s2 + $0xd0] sm:$0xff] }
  0x54   : > { %3127 = vmatprep.subr.bf16.mxu1 %v3725_v19 }
  0x55   : > { %2765 = vmatmul.mubr.msk.f32.gmra.mrb[24].mxu0 %vm332_vm0, %v4053_v12  ;;  %2789 = vmatmul.mubr.msk.f32.gmra.mrb[24].mxu1 %vm332_vm0, %v3969_v63 }
  0x56   : > { %571 = vmatprep.mubr.f32.mxu0 %v3724_v7  ;;  %780 = vmatprep.mubr.f32.mxu1 %v3724_v7 }
  0x59   : > { %2766 = vmatmul.mubr.msk.f32.gmra.mrb[26].mxu0 %vm332_vm0, %v4062_v13  ;;  %2790 = vmatmul.mubr.msk.f32.gmra.mrb[26].mxu1 %vm332_vm0, %v3981_v1 }
  0x5a   : > { %577 = vmatprep.mubr.f32.mxu0 %v3724_v7  ;;  %786 = vmatprep.mubr.f32.mxu1 %v3724_v7 }
  0x5d   : > { %2767 = vmatmul.mubr.msk.f32.gmra.mrb[28].mxu0 %vm332_vm0, %v4071_v14  ;;  %2791 = vmatmul.mubr.msk.f32.gmra.mrb[28].mxu1 %vm332_vm0, %v3993_v3 }
  0x5e   : > { %583 = vmatprep.mubr.f32.mxu0 %v3724_v7  ;;  %792 = vmatprep.mubr.f32.mxu1 %v3724_v7 }
  0x61   : > { %2768 = vmatmul.mubr.msk.f32.gmra.mrb[30].mxu0 %vm332_vm0, %v4086_v17  ;;  %2792 = vmatmul.mubr.msk.f32.gmra.mrb[30].mxu1 %vm332_vm0, %v4005_v5 }
  0x62   : > { %589 = vmatprep.mubr.f32.mxu0 %v3724_v7  ;;  %798 = vmatprep.mubr.f32.mxu1 %v3724_v7 }
  0x65   : > { %2769 = vmatmul.mubr.msk.f32.gmra.mrb[32].mxu0 %vm332_vm0, %v4096_v20  ;;  %2793 = vmatmul.mubr.msk.f32.gmra.mrb[32].mxu1 %vm332_vm0, %v4017_v8 }
  0x66   : > { %595 = vmatprep.mubr.f32.mxu0 %v3724_v7  ;;  %804 = vmatprep.mubr.f32.mxu1 %v3724_v7 }
  0x69   : > { %2770 = vmatmul.mubr.msk.f32.gmra.mrb[34].mxu0 %vm332_vm0, %v4112_v23  ;;  %2794 = vmatmul.mubr.msk.f32.gmra.mrb[34].mxu1 %vm332_vm0, %v4026_v9 }
  0x6a   : > { %601 = vmatprep.mubr.f32.mxu0 %v3724_v7  ;;  %810 = vmatprep.mubr.f32.mxu1 %v3724_v7 }
  0x6d   : > { %2771 = vmatmul.mubr.msk.f32.gmra.mrb[36].mxu0 %vm332_vm0, %v4121_v25  ;;  %2795 = vmatmul.mubr.msk.f32.gmra.mrb[36].mxu1 %vm332_vm0, %v4035_v10 }
  0x6e   : > { %607 = vmatprep.mubr.f32.mxu0 %v3724_v7  ;;  %816 = vmatprep.mubr.f32.mxu1 %v3724_v7 }
  0x71   : > { %2772 = vmatmul.mubr.msk.f32.gmra.mrb[38].mxu0 %vm332_vm0, %v4137_v28  ;;  %2796 = vmatmul.mubr.msk.f32.gmra.mrb[38].mxu1 %vm332_vm0, %v4044_v11 }
  0x72   : > { %613 = vmatprep.mubr.f32.mxu0 %v3724_v7  ;;  %822 = vmatprep.mubr.f32.mxu1 %v3724_v7 }
  0x75   : > { %2773 = vmatmul.mubr.msk.f32.gmra.mrb[40].mxu0 %vm332_vm0, %v4146_v30  ;;  %2797 = vmatmul.mubr.msk.f32.gmra.mrb[40].mxu1 %vm332_vm0, %v4053_v12 }
  0x76   : > { %619 = vmatprep.mubr.f32.mxu0 %v3724_v7  ;;  %828 = vmatprep.mubr.f32.mxu1 %v3724_v7 }
  0x79   : > { %2774 = vmatmul.mubr.msk.f32.gmra.mrb[42].mxu0 %vm332_vm0, %v4162_v35  ;;  %2798 = vmatmul.mubr.msk.f32.gmra.mrb[42].mxu1 %vm332_vm0, %v4062_v13 }
  0x7a   : > { %625 = vmatprep.mubr.f32.mxu0 %v3724_v7  ;;  %834 = vmatprep.mubr.f32.mxu1 %v3724_v7 }
  0x7d   : > { %2775 = vmatmul.mubr.msk.f32.gmra.mrb[44].mxu0 %vm332_vm0, %v4171_v37  ;;  %2799 = vmatmul.mubr.msk.f32.gmra.mrb[44].mxu1 %vm332_vm0, %v4071_v14 }
  0x7e   : > { %631 = vmatprep.mubr.f32.mxu0 %v3724_v7  ;;  %840 = vmatprep.mubr.f32.mxu1 %v3724_v7 }
  0x81   : > { %2776 = vmatmul.mubr.msk.f32.gmra.mrb[46].mxu0 %vm332_vm0, %v4181_v38  ;;  %2800 = vmatmul.mubr.msk.f32.gmra.mrb[46].mxu1 %vm332_vm0, %v4086_v17 }
  0x82   : > { %846 = vmatprep.mubr.f32.mxu1 %v3724_v7  ;;  %1007 = vmatprep.mubr.f32.mxu0 %v3724_v7 }
  0x85   : > { %2801 = vmatmul.mubr.msk.f32.gmra.mrb[48].mxu1 %vm332_vm0, %v4096_v20  ;;  %2817 = vmatmul.mubr.msk.f32.vlgmr.msra.gmra.mrb[48].mxu0 %vm332_vm0, %v3879_v31  ;;  %v2008_v31 = vld [vmem:[%s5233_s2 + $0x40] sm:$0xff] }
  0x86   : > { %852 = vmatprep.mubr.f32.mxu1 %v3724_v7  ;;  %1013 = vmatprep.mubr.f32.mxu0 %v3724_v7  ;;  %v3128_v40 = vpack.c.bf16 %v2009_v39, %v2008_v31 }
  0x87   : > { %3166 = vmatpush3.bf16.msra.mxu0 %v3163_v53 }
  0x88   : > { %3129 = vmatpush1.bf16.msra.mxu1 %v3128_v40 }
  0x89   : > { %2802 = vmatmul.mubr.msk.f32.gmra.mrb[50].mxu1 %vm332_vm0, %v4112_v23  ;;  %2818 = vmatmul.mubr.msk.f32.gmra.mrb[50].mxu0 %vm332_vm0, %v3911_v43  ;;  %v3131_v43 = vpack.c.bf16 %v2011_v42, %v2010_v41  ;;  %v2041_v41 = vld [vmem:[%s5233_s2 + $0x148] sm:$0xff] }
  0x8a   : > { %858 = vmatprep.mubr.f32.mxu1 %v3724_v7  ;;  %1019 = vmatprep.mubr.f32.mxu0 %v3724_v7 }
  0x8b   : > { %3130 = vmatprep.subr.bf16.mxu1 %v3725_v19 }
  0x8c   : > { %3132 = vmatpush1.bf16.msra.mxu1 %v3131_v43 }
  0x8d   : > { %2803 = vmatmul.mubr.msk.f32.gmra.mrb[52].mxu1 %vm332_vm0, %v4121_v25  ;;  %2819 = vmatmul.mubr.msk.f32.gmra.mrb[52].mxu0 %vm332_vm0, %v3942_v55  ;;  %v2017_v55 = vld [vmem:[%s5233_s2 + $0x88] sm:$0xff] }
  0x8e   : > { %864 = vmatprep.mubr.f32.mxu1 %v3724_v7  ;;  %1025 = vmatprep.mubr.f32.mxu0 %v3724_v7  ;;  %v3140_v57 = vpack.c.bf16 %v2017_v55, %v2016_v54  ;;  %v2028_v55 = vld [vmem:[%s5233_s2 + $0xe0] sm:$0xff] }
  0x8f   : > { %3133 = vmatprep.subr.bf16.mxu1 %v3725_v19 }
  0x90   : > { %3135 = vmatpush1.bf16.msra.mxu1 %v3134_v47 }
  0x91   : > { %2804 = vmatmul.mubr.msk.f32.gmra.mrb[54].mxu1 %vm332_vm0, %v4137_v28  ;;  %2820 = vmatmul.mubr.msk.f32.gmra.mrb[54].mxu0 %vm332_vm0, %v3957_v61  ;;  %v2034_v61 = vld [vmem:[%s5233_s2 + $0x110] sm:$0xff] }
  0x92   : > { %870 = vmatprep.mubr.f32.mxu1 %v3724_v7  ;;  %1031 = vmatprep.mubr.f32.mxu0 %v3724_v7 }
  0x93   : > { %3136 = vmatprep.subr.bf16.mxu1 %v3725_v19 }
  0x94   : > { %3138 = vmatpush1.bf16.msra.mxu1 %v3137_v50 }
  0x95   : > { %2805 = vmatmul.mubr.msk.f32.gmra.mrb[56].mxu1 %vm332_vm0, %v4146_v30  ;;  %2821 = vmatmul.mubr.msk.f32.gmra.mrb[56].mxu0 %vm332_vm0, %v3969_v63  ;;  %v2035_v63 = vld [vmem:[%s5233_s2 + $0x118] sm:$0xff] }
  0x96   : > { %876 = vmatprep.mubr.f32.mxu1 %v3724_v7  ;;  %1037 = vmatprep.mubr.f32.mxu0 %v3724_v7 }
  0x97   : > { %3139 = vmatprep.subr.bf16.mxu1 %v3725_v19 }
  0x98   : > { %3141 = vmatpush1.bf16.msra.mxu1 %v3140_v57  ;;  %v2029_v57 = vld [vmem:[%s5233_s2 + $0xe8] sm:$0xff] }
  0x99   : > { %2806 = vmatmul.mubr.msk.f32.gmra.mrb[58].mxu1 %vm332_vm0, %v4162_v35  ;;  %2822 = vmatmul.mubr.msk.f32.gmra.mrb[58].mxu0 %vm332_vm0, %v3981_v1  ;;  %v3167_v1 = vpack.c.bf16 %v2035_v63, %v2034_v61 }
  0x9a   : > { %882 = vmatprep.mubr.f32.mxu1 %v3724_v7  ;;  %1043 = vmatprep.mubr.f32.mxu0 %v3724_v7 }
  0x9b   : > { %3142 = vmatprep.subr.bf16.mxu1 %v3725_v19  ;;  %3168 = vmatprep.subr.bf16.mxu0 %v3167_v1 }
  0x9c   : > { %3144 = vmatpush1.bf16.msra.mxu1 %v3143_v60  ;;  %3170 = vmatpush3.bf16.msra.mxu0 %v3167_v1 }
  0x9d   : > { %2807 = vmatmul.mubr.msk.f32.gmra.mrb[60].mxu1 %vm332_vm0, %v4171_v37  ;;  %2823 = vmatmul.mubr.msk.f32.gmra.mrb[60].mxu0 %vm332_vm0, %v3993_v3  ;;  %v2020_v3 = vld [vmem:[%s5233_s2 + $0xa0] sm:$0xff] }
  0x9e   : > { %888 = vmatprep.mubr.f32.mxu1 %v3724_v7  ;;  %1049 = vmatprep.mubr.f32.mxu0 %v3724_v7 }
  0x9f   : > { %3145 = vmatprep.subr.bf16.mxu1 %v3725_v19 }
  0xa1   : > { %2808 = vmatmul.mubr.msk.f32.gmra.mrb[62].mxu1 %vm332_vm0, %v4181_v38  ;;  %2824 = vmatmul.mubr.msk.f32.gmra.mrb[62].mxu0 %vm332_vm0, %v4005_v5 }
  0xa2   : > { %894 = vmatprep.mubr.f32.mxu1 %v3724_v7  ;;  %1055 = vmatprep.mubr.f32.mxu0 %v3724_v7 }
  0xa5   : > { %2809 = vmatmul.mubr.msk.f32.gmra.mrb[64].mxu1 %vm332_vm0, %v3882_v32  ;;  %2825 = vmatmul.mubr.msk.f32.gmra.mrb[64].mxu0 %vm332_vm0, %v4017_v8  ;;  %v2023_v8 = vld [vmem:[%s5233_s2 + $0xb8] sm:$0xff] }
  0xa6   : > { %900 = vmatprep.mubr.f32.mxu1 %v3724_v7  ;;  %1061 = vmatprep.mubr.f32.mxu0 %v3724_v7 }
  0xa9   : > { %2810 = vmatmul.mubr.msk.f32.gmra.mrb[66].mxu1 %vm332_vm0, %v3914_v44  ;;  %2826 = vmatmul.mubr.msk.f32.gmra.mrb[66].mxu0 %vm332_vm0, %v4026_v9  ;;  %v2036_v9 = vld [vmem:[%s5233_s2 + $0x120] sm:$0xff] }
  0xaa   : > { %906 = vmatprep.mubr.f32.mxu1 %v3724_v7  ;;  %1067 = vmatprep.mubr.f32.mxu0 %v3724_v7 }
  0xad   : > { %2811 = vmatmul.mubr.msk.f32.gmra.mrb[68].mxu1 %vm332_vm0, %v3945_v56  ;;  %2827 = vmatmul.mubr.msk.f32.gmra.mrb[68].mxu0 %vm332_vm0, %v4035_v10  ;;  %v2037_v10 = vld [vmem:[%s5233_s2 + $0x128] sm:$0xff] }
  0xae   : > { %912 = vmatprep.mubr.f32.mxu1 %v3724_v7  ;;  %1073 = vmatprep.mubr.f32.mxu0 %v3724_v7 }
  0xb1   : > { %2812 = vmatmul.mubr.msk.f32.gmra.mrb[70].mxu1 %vm332_vm0, %v3960_v62  ;;  %2828 = vmatmul.mubr.msk.f32.gmra.mrb[70].mxu0 %vm332_vm0, %v4044_v11 }
  0xb2   : > { %918 = vmatprep.mubr.f32.mxu1 %v3724_v7  ;;  %1079 = vmatprep.mubr.f32.mxu0 %v3724_v7 }
  0xb5   : > { %2813 = vmatmul.mubr.msk.f32.gmra.mrb[72].mxu1 %vm332_vm0, %v3972_v0  ;;  %2829 = vmatmul.mubr.msk.f32.gmra.mrb[72].mxu0 %vm332_vm0, %v4053_v12 }
  0xb6   : > { %924 = vmatprep.mubr.f32.mxu1 %v3724_v7  ;;  %1085 = vmatprep.mubr.f32.mxu0 %v3724_v7 }
  0xb9   : > { %2814 = vmatmul.mubr.msk.f32.gmra.mrb[74].mxu1 %vm332_vm0, %v3984_v2  ;;  %2830 = vmatmul.mubr.msk.f32.gmra.mrb[74].mxu0 %vm332_vm0, %v4062_v13  ;;  %v2024_v13 = vld [vmem:[%s5233_s2 + $0xc0] sm:$0xff] }
  0xba   : > { %930 = vmatprep.mubr.f32.mxu1 %v3724_v7  ;;  %1091 = vmatprep.mubr.f32.mxu0 %v3724_v7 }
  0xbd   : > { %2815 = vmatmul.mubr.msk.f32.gmra.mrb[76].mxu1 %vm332_vm0, %v3996_v4  ;;  %2831 = vmatmul.mubr.msk.f32.gmra.mrb[76].mxu0 %vm332_vm0, %v4071_v14 }
  0xbe   : > { %936 = vmatprep.mubr.f32.mxu1 %v3724_v7  ;;  %1097 = vmatprep.mubr.f32.mxu0 %v3724_v7 }
  0xc1   : > { %2816 = vmatmul.mubr.msk.f32.gmra.mrb[78].mxu1 %vm332_vm0, %v4008_v6  ;;  %2832 = vmatmul.mubr.msk.f32.gmra.mrb[78].mxu0 %vm332_vm0, %v4086_v17 }
  0xc2   : > { %1103 = vmatprep.mubr.f32.mxu0 %v3724_v7 }
  0xc5   : > { %2833 = vmatmul.mubr.msk.f32.gmra.mrb[80].mxu0 %vm332_vm0, %v4096_v20 }
  0xc6   : > { %1109 = vmatprep.mubr.f32.mxu0 %v3724_v7 }
  0xc9   : > { %2834 = vmatmul.mubr.msk.f32.gmra.mrb[82].mxu0 %vm332_vm0, %v4112_v23 }
  0xca   : > { %1115 = vmatprep.mubr.f32.mxu0 %v3724_v7 }
  0xcd   : > { %2835 = vmatmul.mubr.msk.f32.gmra.mrb[84].mxu0 %vm332_vm0, %v4121_v25 }
  0xce   : > { %1121 = vmatprep.mubr.f32.mxu0 %v3724_v7 }
  0xd1   : > { %2836 = vmatmul.mubr.msk.f32.gmra.mrb[86].mxu0 %vm332_vm0, %v4137_v28  ;;  %v2039_v28 = vld [vmem:[%s5233_s2 + $0x138] sm:$0xff] }
  0xd2   : > { %1127 = vmatprep.mubr.f32.mxu0 %v3724_v7 }
  0xd5   : > { %2837 = vmatmul.mubr.msk.f32.gmra.mrb[88].mxu0 %vm332_vm0, %v4146_v30  ;;  %v3175_v30 = vpack.c.bf16 %v2039_v28, %v2038_v27 }
  0xd6   : > { %1133 = vmatprep.mubr.f32.mxu0 %v3724_v7 }
  0xd9   : > { %2838 = vmatmul.mubr.msk.f32.gmra.mrb[90].mxu0 %vm332_vm0, %v4162_v35 }
  0xda   : > { %1139 = vmatprep.mubr.f32.mxu0 %v3724_v7 }
  0xdd   : > { %2839 = vmatmul.mubr.msk.f32.gmra.mrb[92].mxu0 %vm332_vm0, %v4171_v37  ;;  %v2027_v37 = vld [vmem:[%s5233_s2 + $0xd8] sm:$0xff] }
  0xde   : > { %1145 = vmatprep.mubr.f32.mxu0 %v3724_v7  ;;  %v3155_v40 = vpack.c.bf16 %v2027_v37, %v2026_v36  ;;  %v2030_v37 = vld [vmem:[%s5233_s2 + $0xf0] sm:$0xff] }
  0xe1   : > { %2840 = vmatmul.mubr.msk.f32.gmra.mrb[94].mxu0 %vm332_vm0, %v4181_v38 }
  0xe2   : > { %1151 = vmatprep.mubr.f32.mxu0 %v3724_v7 }
  0xe5   : > { %2841 = vmatmul.mubr.msk.f32.gmra.mrb[96].mxu0 %vm332_vm0, %v3882_v32  ;;  %v2021_v32 = vld [vmem:[%s5233_s2 + $0xa8] sm:$0xff] }
  0xe6   : > { %1157 = vmatprep.mubr.f32.mxu0 %v3724_v7  ;;  %v3146_v5 = vpack.c.bf16 %v2021_v32, %v2020_v3  ;;  %v3158_v32 = vpack.c.bf16 %v2029_v57, %v2028_v55 }
  0xe8   : > { %3147 = vmatpush1.bf16.msra.mxu1 %v3146_v5  ;;  %v2043_v5 = vld [vmem:[%s5233_s2 + $0x158] sm:$0xff] }
  0xe9   : > { %2842 = vmatmul.mubr.msk.f32.gmra.mrb[98].mxu0 %vm332_vm0, %v3914_v44  ;;  %3148 = vmatprep.subr.bf16.mxu1 %v3725_v19  ;;  %v2022_v44 = vld [vmem:[%s5233_s2 + $0xb0] sm:$0xff] }
  0xea   : > { %1163 = vmatprep.mubr.f32.mxu0 %v3724_v7 }
  0xed   : > { %2843 = vmatmul.mubr.msk.f32.gmra.mrb[100].mxu0 %vm332_vm0, %v3945_v56  ;;  %v3149_v56 = vpack.c.bf16 %v2023_v8, %v2022_v44  ;;  %v3183_v8 = vpack.c.bf16 %v2043_v5, %v2042_v58 }
  0xee   : > { %1169 = vmatprep.mubr.f32.mxu0 %v3724_v7 }
  0xef   : > { %3150 = vmatpush1.bf16.msra.mxu1 %v3149_v56 }
  0xf0   : > { %3151 = vmatprep.subr.bf16.mxu1 %v3725_v19 }
  0xf1   : > { %2844 = vmatmul.mubr.msk.f32.gmra.mrb[102].mxu0 %vm332_vm0, %v3960_v62  ;;  %v3171_v62 = vpack.c.bf16 %v2037_v10, %v2036_v9 }
  0xf2   : > { %1175 = vmatprep.mubr.f32.mxu0 %v3724_v7 }
  0xf3   : > { %3172 = vmatprep.subr.bf16.mxu0 %v3171_v62 }
  0xf4   : > { %3174 = vmatpush3.bf16.msra.mxu0 %v3171_v62 }
  0xf5   : > { %2845 = vmatmul.mubr.msk.f32.gmra.mrb[104].mxu0 %vm332_vm0, %v3972_v0  ;;  %v2025_v0 = vld [vmem:[%s5233_s2 + $0xc8] sm:$0xff]  ;;  %3176 = vmatprep.subr.bf16.mxu0 %v3175_v30 }
  0xf6   : > { %1181 = vmatprep.mubr.f32.mxu0 %v3724_v7  ;;  %v3152_v17 = vpack.c.bf16 %v2025_v0, %v2024_v13 }
  0xf8   : > { %v4397_v11 = vpop.f32.mrb[0].mxu0  ;;  %v4399_v12 = vpop.f32.mrb[0].mxu1  ;;  %3153 = vmatpush1.bf16.msra.mxu1 %v3152_v17  ;;  %3178 = vmatpush3.bf16.msra.mxu0 %v3175_v30 }
  0xf9   : > { %5283 = vst [vmem:[#allocation6_spill] sm:$0xff] %v4399_v12  ;;  %v2849_v14 = vmul.f32 -1.442695, %v4397_v11  ;;  %v4408_v15 = vpop.f32.mrb[1].mxu0  ;;  %2846 = vmatmul.mubr.msk.f32.gmra.mrb[106].mxu0 %vm332_vm0, %v3984_v2  ;;  %v4412_v16 = vpop.f32.mrb[1].mxu1  ;;  %3154 = vmatprep.subr.bf16.mxu1 %v3725_v19 }
  0xfa   : > { %5284 = vst [vmem:[#allocation7_spill] sm:$0xff] %v4412_v16  ;;  %v2850_v18 = vmul.f32 -1.442695, %v4408_v15  ;;  %1187 = vmatprep.mubr.f32.mxu0 %v3724_v7  ;;  %v2921_v20 = vmul.f32 -1.442695, %v4399_v12 }
  0xfb   : > { %3260 = vpow2.f32 %v2849_v14  ;;  %v2922_v22 = vmul.f32 -1.442695, %v4412_v16 }
  0xfc   : > { %v4417_v21 = vpop.f32.mrb[2].mxu0  ;;  %v4420_v23 = vpop.f32.mrb[2].mxu1  ;;  %3262 = vpow2.f32 %v2850_v18  ;;  %3156 = vmatpush1.bf16.msra.mxu1 %v3155_v40 }
  0xfd   : > { %5285 = vst [vmem:[#allocation8_spill] sm:$0xff] %v4420_v23  ;;  %v2852_v2 = vmul.f32 -1.442695, %v4417_v21  ;;  %v4424_v24 = vpop.f32.mrb[3].mxu0  ;;  %2847 = vmatmul.mubr.msk.f32.gmra.mrb[108].mxu0 %vm332_vm0, %v3996_v4  ;;  %v4428_v25 = vpop.f32.mrb[3].mxu1  ;;  %3264 = vpow2.f32 %v2921_v20  ;;  %3157 = vmatprep.subr.bf16.mxu1 %v3725_v19 }
  0xfe   : > { %5286 = vst [vmem:[#allocation9_spill] sm:$0xff] %v4428_v25  ;;  %v2853_v26 = vmul.f32 -1.442695, %v4424_v24  ;;  %1193 = vmatprep.mubr.f32.mxu0 %v3724_v7  ;;  %v2924_v7 = vmul.f32 -1.442695, %v4420_v23 }
  0xff   : > { %3266 = vpow2.f32 %v2852_v2  ;;  %v2925_v48 = vmul.f32 -1.442695, %v4428_v25 }
 0x100   : > { %v4438_v29 = vpop.f32.mrb[4].mxu0  ;;  %3268 = vpow2.f32 %v2922_v22  ;;  %v4440_v4 = vpop.f32.mrb[4].mxu1  ;;  %3159 = vmatpush1.bf16.msra.mxu1 %v3158_v32 }
 0x101   : > { %5287 = vst [vmem:[#allocation10_spill] sm:$0xff] %v4440_v4  ;;  %v2855_v33 = vmul.f32 -1.442695, %v4438_v29  ;;  %v4443_v34 = vpop.f32.mrb[5].mxu0  ;;  %2848 = vmatmul.mubr.msk.f32.gmra.mrb[110].mxu0 %vm332_vm0, %v4008_v6  ;;  %v4448_v35 = vpop.f32.mrb[5].mxu1  ;;  %3270 = vpow2.f32 %v2853_v26  ;;  %v2040_v6 = vld [vmem:[%s5233_s2 + $0x140] sm:$0xff]  ;;  %3160 = vmatprep.subr.bf16.mxu1 %v3725_v19 }
 0x102   : > { %5288 = vst [vmem:[#allocation11_spill] sm:$0xff] %v4448_v35  ;;  %v2856_v38 = vmul.f32 -1.442695, %v4443_v34  ;;  %v3179_v47 = vpack.c.bf16 %v2041_v41, %v2040_v6  ;;  %v2927_v50 = vmul.f32 -1.442695, %v4440_v4  ;;  %v2031_v6 = vld [vmem:[%s5233_s2 + $0xf8] sm:$0xff] }
 0x103   : > { %3272 = vpow2.f32 %v2855_v33  ;;  %v2928_v61 = vmul.f32 -1.442695, %v4448_v35  ;;  %v3161_v40 = vpack.c.bf16 %v2031_v6, %v2030_v37  ;;  %v2044_v41 = vld [vmem:[%s5233_s2 + $0x160] sm:$0xff] }
 0x104   : > { %v4460_v31 = vpop.f32.mrb[6].mxu0  ;;  %v4462_v39 = vpop.f32.mrb[6].mxu1  ;;  %3274 = vpow2.f32 %v2924_v7  ;;  %3180 = vmatprep.subr.bf16.mxu0 %v3179_v47 }
 0x105   : > { %5289 = vst [vmem:[#allocation12_spill] sm:$0xff] %v4462_v39  ;;  %v3261_v42 = vpop.eup %3260  ;;  %v2858_v43 = vmul.f32 -1.442695, %v4460_v31  ;;  %v4468_v45 = vpop.f32.mrb[7].mxu0  ;;  %3182 = vmatpush3.bf16.msra.mxu0 %v3179_v47  ;;  %3162 = vmatpush1.bf16.msra.mxu1 %v3161_v40 }
 0x106   : > { %v4470_v46 = vpop.f32.mrb[7].mxu1  ;;  %v3263_v49 = vpop.eup %3262  ;;  %v1488_v52 = vadd.f32 1.0, %v3261_v42  ;;  %3184 = vmatprep.subr.bf16.mxu0 %v3183_v8  ;;  %v2859_v30 = vmul.f32 -1.442695, %v4468_v45  ;;  %v2045_v42 = vld [vmem:[%s5233_s2 + $0x168] sm:$0xff] }
 0x107   : > { %5290 = vst [vmem:[#allocation13_spill] sm:$0xff] %v4470_v46  ;;  %3276 = vpow2.f32 %v2858_v43  ;;  %v3265_v51 = vpop.eup %3264  ;;  %v1489_v1 = vadd.f32 1.0, %v3263_v49 }
 0x108   : > { %3278 = vpow2.f32 %v2856_v38  ;;  %v4475_v53 = vpop.f32.mrb[8].mxu0  ;;  %v4477_v54 = vpop.f32.mrb[8].mxu1  ;;  %v1560_v44 = vadd.f32 1.0, %v3265_v51 }
 0x109   : > { %5291 = vst [vmem:[#allocation14_spill] sm:$0xff] %v4477_v54  ;;  %v3267_v59 = vpop.eup %3266  ;;  %v4488_v60 = vpop.f32.mrb[9].mxu0  ;;  %3280 = vpow2.f32 %v2925_v48  ;;  %v2861_v17 = vmul.f32 -1.442695, %v4475_v53  ;;  %3186 = vmatpush3.bf16.msra.mxu0 %v3183_v8 }
 0x10a   : > { %v3269_v63 = vpop.eup %3268  ;;  %v4491_v3 = vpop.f32.mrb[9].mxu1  ;;  %3282 = vpow2.f32 %v2927_v50  ;;  %v1491_v56 = vadd.f32 1.0, %v3267_v59  ;;  %v3187_v50 = vpack.c.bf16 %v2045_v42, %v2044_v41  ;;  %v2862_v59 = vmul.f32 -1.442695, %v4488_v60 }
 0x10b   : > { %5292 = vst [vmem:[#allocation15_spill] sm:$0xff] %v4491_v3  ;;  %v3271_v9 = vpop.eup %3270  ;;  %3284 = vrcp.f32 %v1488_v52  ;;  %v1561_v0 = vadd.f32 1.0, %v3269_v63  ;;  %v2047_v63 = vld [vmem:[%s5233_s2 + $0x178] sm:$0xff]  ;;  %v2933_v42 = vmul.f32 -1.442695, %v4477_v54 }
 0x10c   : > { %v4496_v10 = vpop.f32.mrb[10].mxu0  ;;  %v4498_v62 = vpop.f32.mrb[10].mxu1  ;;  %3286 = vpow2.f32 %v2928_v61  ;;  %v1492_v2 = vadd.f32 1.0, %v3271_v9  ;;  %3188 = vmatprep.subr.bf16.mxu0 %v3187_v50  ;;  %v2046_v61 = vld [vmem:[%s5233_s2 + $0x170] sm:$0xff] }
 0x10d   : > { %5293 = vst [vmem:[#allocation16_spill] sm:$0xff] %v4498_v62  ;;  %v3273_v13 = vpop.eup %3272  ;;  %v4500_v14 = vpop.f32.mrb[11].mxu0  ;;  %3288 = vrcp.f32 %v1489_v1  ;;  %v2864_v38 = vmul.f32 -1.442695, %v4496_v10  ;;  %3190 = vmatpush3.bf16.msra.mxu0 %v3187_v50  ;;  %v3191_v5 = vpack.c.bf16 %v2047_v63, %v2046_v61 }
 0x10e   : > { %v4504_v18 = vpop.f32.mrb[11].mxu1  ;;  %v3275_v20 = vpop.eup %3274  ;;  %v1494_v22 = vadd.f32 1.0, %v3273_v13  ;;  %3290 = vrcp.f32 %v1560_v44  ;;  %v2865_v8 = vmul.f32 -1.442695, %v4500_v14 }
 0x10f   : > { %5294 = vst [vmem:[#allocation17_spill] sm:$0xff] %v4504_v18  ;;  %3292 = vrcp.f32 %v1491_v56  ;;  %v1563_v7 = vadd.f32 1.0, %v3275_v20  ;;  %3192 = vmatprep.subr.bf16.mxu0 %v3191_v5  ;;  %v2937_v25 = vmul.f32 -1.442695, %v4504_v18 }
 0x110   : > { %v4506_v26 = vpop.f32.mrb[12].mxu0  ;;  %v4508_v27 = vpop.f32.mrb[12].mxu1  ;;  %3294 = vrcp.f32 %v1561_v0 }
 0x111   : > { %5295 = vst [vmem:[#allocation18_spill] sm:$0xff] %v4508_v27  ;;  %v3277_v28 = vpop.eup %3276  ;;  %v4511_v19 = vpop.f32.mrb[13].mxu0  ;;  %3296 = vpow2.f32 %v2861_v17  ;;  %v2867_v17 = vmul.f32 -1.442695, %v4506_v26  ;;  %3194 = vmatpush3.bf16.msra.mxu0 %v3191_v5 }
 0x112   : > { %5296 = vst [vmem:[#allocation19_spill] sm:$0xff] %v4511_v19  ;;  %v3279_v33 = vpop.eup %3278  ;;  %v4513_v36 = vpop.f32.mrb[13].mxu1  ;;  %3298 = vrcp.f32 %v1494_v22  ;;  %v1497_v47 = vadd.f32 1.0, %v3277_v28 }
 0x113   : > { %5297 = vst [vmem:[#allocation20_spill] sm:$0xff] %v4513_v36  ;;  %v3281_v43 = vpop.eup %3280  ;;  %3300 = vrcp.f32 %v1492_v2  ;;  %v1495_v52 = vadd.f32 1.0, %v3279_v33  ;;  %v2930_v2 = vmul.f32 -1.442695, %v4462_v39 }
 0x114   : > { %v4528_v48 = vpop.f32.mrb[14].mxu0  ;;  %v4530_v49 = vpop.f32.mrb[14].mxu1  ;;  %3302 = vpow2.f32 %v2859_v30  ;;  %v1564_v32 = vadd.f32 1.0, %v3281_v43 }
 0x115   : > { %5298 = vst [vmem:[#allocation21_spill] sm:$0xff] %v4530_v49  ;;  %v3283_v51 = vpop.eup %3282  ;;  %v4532_v55 = vpop.f32.mrb[15].mxu0  ;;  %3304 = vrcp.f32 %v1563_v7 }
 0x116   : > { %5299 = vst [vmem:[#allocation22_spill] sm:$0xff] %v4532_v55  ;;  %v4534_v57 = vpop.f32.mrb[15].mxu1  ;;  %v3285_v58 = vpop.eup %3284  ;;  %3306 = vpow2.f32 %v2864_v38  ;;  %v1566_v50 = vadd.f32 1.0, %v3283_v51 }
 0x117   : > { %5300 = vst [vmem:[#allocation23_spill] sm:$0xff] %v4534_v57  ;;  %v3287_v1 = vpop.eup %3286  ;;  %3308 = vrcp.f32 %v1497_v47  ;;  %v1776_v0 = vmul.f32 %v3285_v58, %v4397_v11  ;;  %v2931_v11 = vmul.f32 -1.442695, %v4470_v46 }
 0x118   : > { %v4543_v44 = vpop.eup %3288  ;;  %v4546_v9 = vpop.f32.mrb[16].mxu0  ;;  %3310 = vrcp.f32 %v1495_v52 }
 0x119   : > { %v4548_v56 = vpop.f32.mrb[16].mxu1  ;;  %v4550_v13 = vpop.eup %3290  ;;  %3312 = vpow2.f32 %v2862_v59  ;;  %v2868_v59 = vmul.f32 -1.442695, %v4511_v19 }
 0x11a   : > { %5301 = vst [vmem:[#allocation24_spill] sm:$0xff] %v4550_v13  ;;  %v4554_v20 = vpop.f32.mrb[17].mxu0  ;;  %v3293_v22 = vpop.eup %3292  ;;  %3314 = vrcp.f32 %v1564_v32 }
 0x11b   : > { %5302 = vst [vmem:[#allocation25_spill] sm:$0xff] %v4554_v20  ;;  %v754_v28 = vpop.f32.mrb[17].mxu1  ;;  %v4557_v30 = vpop.eup %3294  ;;  %3316 = vpow2.f32 %v2865_v8  ;;  %v1779_v40 = vmul.f32 %v3293_v22, %v4417_v21 }
 0x11c   : > { %5303 = vst [vmem:[#allocation26_spill] sm:$0xff] %v4557_v30  ;;  %v4559_v33 = vmul.f32 %v1776_v0, %v754_v28  ;;  %v3297_v7 = vpop.eup %3296  ;;  %v4562_v37 = vpop.f32.mrb[18].mxu0  ;;  %3318 = vpow2.f32 %v2867_v17  ;;  %v1567_v0 = vadd.f32 1.0, %v3287_v1 }
 0x11d   : > { %v4564_v6 = vpop.f32.mrb[18].mxu1  ;;  %v3299_v38 = vpop.eup %3298  ;;  %v1500_v41 = vadd.f32 1.0, %v3297_v7  ;;  %3320 = vpow2.f32 %v2930_v2 }
 0x11e   : > { %v4568_v43 = vpop.f32.mrb[19].mxu0  ;;  %v4570_v47 = vpop.eup %3300  ;;  %v1782_v21 = vmul.f32 %v3299_v38, %v4438_v29  ;;  %v2936_v29 = vmul.f32 -1.442695, %v4498_v62  ;;  %v2870_v38 = vmul.f32 -1.442695, %v4528_v48 }
 0x11f   : > { %5304 = vst [vmem:[#allocation27_spill] sm:$0xff] %v4568_v43  ;;  %v760_v52 = vpop.f32.mrb[19].mxu1  ;;  %v3303_v58 = vpop.eup %3302  ;;  %3322 = vrcp.f32 %v1500_v41  ;;  %v2854_v4 = vmul.f32 -1.442695, %v4564_v6 }
 0x120   : > { %v4573_v61 = vmul.f32 %v1779_v40, %v760_v52  ;;  %v4575_v63 = vpop.eup %3304  ;;  %3324 = vpow2.f32 %v2931_v11  ;;  %v4578_v32 = vpop.f32.mrb[20].mxu0  ;;  %v1498_v2 = vadd.f32 1.0, %v3303_v58  ;;  %v2934_v52 = vmul.f32 -1.442695, %v4491_v3 }
 0x121   : > { %5305 = vst [vmem:[#allocation28_spill] sm:$0xff] %v4575_v63  ;;  %v4580_v5 = vpop.f32.mrb[20].mxu1  ;;  %v3307_v8 = vpop.eup %3306  ;;  %3326 = vpow2.f32 %v2933_v42 }
 0x122   : > { %v4582_v51 = vpop.f32.mrb[21].mxu0  ;;  %v766_v17 = vpop.f32.mrb[21].mxu1  ;;  %3328 = vrcp.f32 %v1566_v50  ;;  %v1503_v28 = vadd.f32 1.0, %v3307_v8 }
 0x123   : > { %5306 = vst [vmem:[#allocation29_spill] sm:$0xff] %v4582_v51  ;;  %v3309_v22 = vpop.eup %3308  ;;  %v4584_v7 = vmul.f32 %v1782_v21, %v766_v17  ;;  %3330 = vpow2.f32 %v2868_v59 }
 0x124   : > { %v4586_v40 = vpop.eup %3310  ;;  %3332 = vrcp.f32 %v1503_v28  ;;  %v4590_v1 = vpop.f32.mrb[22].mxu0  ;;  %v1785_v50 = vmul.f32 %v3309_v22, %v4460_v31  ;;  %v2939_v22 = vmul.f32 -1.442695, %v4508_v27 }
 0x125   : > { %v3313_v11 = vpop.eup %3312  ;;  %v4592_v41 = vpop.f32.mrb[22].mxu1  ;;  %3334 = vrcp.f32 %v1567_v0 }
 0x126   : > { %v4594_v42 = vpop.eup %3314  ;;  %v4598_v58 = vpop.f32.mrb[23].mxu0  ;;  %3336 = vrcp.f32 %v1498_v2  ;;  %v1501_v17 = vadd.f32 1.0, %v3313_v11 }
 0x127   : > { %5307 = vst [vmem:[#allocation30_spill] sm:$0xff] %v4594_v42  ;;  %5308 = vst [vmem:[#allocation31_spill] sm:$0xff] %v4598_v58  ;;  %v3317_v59 = vpop.eup %3316  ;;  %v772_v21 = vpop.f32.mrb[23].mxu1  ;;  %3338 = vpow2.f32 %v2936_v29 }
 0x128   : > { %v3319_v8 = vpop.eup %3318  ;;  %v4600_v28 = vmul.f32 %v1785_v50, %v772_v21  ;;  %3340 = vpow2.f32 %v2870_v38  ;;  %v4603_v42 = vpop.f32.mrb[24].mxu0  ;;  %v1504_v11 = vadd.f32 1.0, %v3317_v59  ;;  %v2871_v38 = vmul.f32 -1.442695, %v4532_v55 }
 0x129   : > { %v3321_v46 = vpop.eup %3320  ;;  %v1506_v35 = vadd.f32 1.0, %v3319_v8  ;;  %v4605_v31 = vpop.f32.mrb[24].mxu1  ;;  %3342 = vpow2.f32 %v2934_v52 }
 0x12a   : > { %v3323_v0 = vpop.eup %3322  ;;  %v4608_v2 = vpop.f32.mrb[25].mxu0  ;;  %v1569_v18 = vadd.f32 1.0, %v3321_v46 }
 0x12b   : > { %5309 = vst [vmem:[#allocation32_spill] sm:$0xff] %v4608_v2  ;;  %v3325_v3 = vpop.eup %3324  ;;  %v1788_v29 = vmul.f32 %v3323_v0, %v4475_v53  ;;  %3344 = vrcp.f32 %v1506_v35  ;;  %v778_v50 = vpop.f32.mrb[25].mxu1 }
 0x12c   : > { %v3327_v21 = vpop.eup %3326  ;;  %3346 = vrcp.f32 %v1501_v17  ;;  %v4616_v52 = vpop.f32.mrb[26].mxu0  ;;  %v1570_v27 = vadd.f32 1.0, %v3325_v3 }
 0x12d   : > { %v4612_v8 = vpop.eup %3328  ;;  %3348 = vpow2.f32 %v2937_v25  ;;  %v4614_v30 = vmul.f32 %v1788_v29, %v778_v50  ;;  %v4618_v16 = vpop.f32.mrb[26].mxu1  ;;  %v1572_v17 = vadd.f32 1.0, %v3327_v21  ;;  %v2942_v25 = vmul.f32 -1.442695, %v4530_v49 }
 0x12e   : > { %5310 = vst [vmem:[#allocation33_spill] sm:$0xff] %v4612_v8  ;;  %v3331_v57 = vpop.eup %3330  ;;  %3350 = vpow2.f32 %v2939_v22  ;;  %v4620_v53 = vpop.f32.mrb[27].mxu0  ;;  %v2874_v49 = vmul.f32 -1.442695, %v4554_v20 }
 0x12f   : > { %5311 = vst [vmem:[#allocation34_spill] sm:$0xff] %v4614_v30  ;;  %5312 = vst [vmem:[#allocation35_spill] sm:$0xff] %v4620_v53  ;;  %v784_v35 = vpop.f32.mrb[27].mxu1  ;;  %v3333_v59 = vpop.eup %3332  ;;  %3352 = vrcp.f32 %v1504_v11  ;;  %v1507_v50 = vadd.f32 1.0, %v3331_v57 }
 0x130   : > { %v4622_v0 = vpop.eup %3334  ;;  %v1791_v46 = vmul.f32 %v3333_v59, %v4496_v10  ;;  %3354 = vpow2.f32 %v2871_v38  ;;  %v4628_v62 = vpop.f32.mrb[28].mxu0  ;;  %v2873_v10 = vmul.f32 -1.442695, %v4546_v9 }
 0x131   : > { %5313 = vst [vmem:[#allocation36_spill] sm:$0xff] %v4622_v0  ;;  %v4626_v29 = vpop.eup %3336  ;;  %3356 = vrcp.f32 %v1569_v18  ;;  %v4630_v3 = vpop.f32.mrb[28].mxu1  ;;  %v2851_v18 = vmul.f32 -1.442695, %v4548_v56 }
 0x132   : > { %v3339_v22 = vpop.eup %3338  ;;  %3358 = vrcp.f32 %v1570_v27  ;;  %v4632_v54 = vmul.f32 %v1791_v46, %v784_v35  ;;  %v4634_v11 = vpop.f32.mrb[29].mxu0 }
 0x133   : > { %v790_v21 = vpop.f32.mrb[29].mxu1  ;;  %v3341_v0 = vpop.eup %3340  ;;  %3360 = vrcp.f32 %v1572_v17  ;;  %v1575_v39 = vadd.f32 1.0, %v3339_v22 }
 0x134   : > { %5314 = vst [vmem:[#allocation37_spill] sm:$0xff] %v4632_v54  ;;  %v4637_v38 = vpop.eup %3342  ;;  %v1509_v59 = vadd.f32 1.0, %v3341_v0  ;;  %3362 = vpow2.f32 %v2942_v25  ;;  %v4641_v27 = vpop.f32.mrb[30].mxu0 }
 0x135   : > { %5315 = vst [vmem:[#allocation38_spill] sm:$0xff] %v4637_v38  ;;  %v3345_v57 = vpop.eup %3344  ;;  %3364 = vrcp.f32 %v1507_v50  ;;  %v4643_v35 = vpop.f32.mrb[30].mxu1  ;;  %v2876_v50 = vmul.f32 -1.442695, %v4562_v37 }
 0x136   : > { %v4645_v46 = vpop.eup %3346  ;;  %v1794_v17 = vmul.f32 %v3345_v57, %v4506_v26  ;;  %3366 = vrcp.f32 %v1509_v59  ;;  %v4648_v8 = vpop.f32.mrb[31].mxu0  ;;  %v2940_v26 = vmul.f32 -1.442695, %v4513_v36 }
 0x137   : > { %v796_v0 = vpop.f32.mrb[31].mxu1  ;;  %v4650_v25 = vpop.eup %3348  ;;  %3368 = vpow2.f32 %v2873_v10  ;;  %v2877_v10 = vmul.f32 -1.442695, %v4568_v43 }
 0x138   : > { %5316 = vst [vmem:[#allocation39_spill] sm:$0xff] %v4650_v25  ;;  %v3351_v38 = vpop.eup %3350  ;;  %3370 = vpow2.f32 %v2851_v18  ;;  %v4654_v63 = vmul.f32 %v1794_v17, %v790_v21  ;;  %v4659_v22 = vpop.f32.mrb[32].mxu0 }
 0x139   : > { %v4656_v23 = vpop.eup %3352  ;;  %3372 = vpow2.f32 %v2874_v49  ;;  %v4661_v59 = vpop.f32.mrb[32].mxu1  ;;  %v1578_v21 = vadd.f32 1.0, %v3351_v38  ;;  %v2879_v49 = vmul.f32 -1.442695, %v4578_v32 }
 0x13a   : > { %5317 = vst [vmem:[#allocation40_spill] sm:$0xff] %v4654_v63  ;;  %v3355_v57 = vpop.eup %3354  ;;  %3374 = vrcp.f32 %v1575_v39  ;;  %v4664_v25 = vpop.f32.mrb[33].mxu0 }
 0x13b   : > { %v4666_v18 = vpop.f32.mrb[33].mxu1  ;;  %v4668_v13 = vpop.eup %3356  ;;  %3376 = vpow2.f32 %v2876_v50  ;;  %v1510_v12 = vadd.f32 1.0, %v3355_v57  ;;  %v2857_v50 = vmul.f32 -1.442695, %v4580_v5 }
 0x13c   : > { %5318 = vst [vmem:[#allocation41_spill] sm:$0xff] %v4668_v13  ;;  %v4670_v17 = vpop.eup %3358  ;;  %3378 = vpow2.f32 %v2854_v4  ;;  %v4675_v39 = vpop.f32.mrb[34].mxu0 }
 0x13d   : > { %5319 = vst [vmem:[#allocation42_spill] sm:$0xff] %v4670_v17  ;;  %v4673_v36 = vpop.eup %3360  ;;  %3380 = vpow2.f32 %v2940_v26  ;;  %v4677_v43 = vpop.f32.mrb[34].mxu1 }
 0x13e   : > { %5320 = vst [vmem:[#allocation43_spill] sm:$0xff] %v4673_v36  ;;  %v3363_v20 = vpop.eup %3362  ;;  %3382 = vpow2.f32 %v2877_v10  ;;  %v4679_v63 = vpop.f32.mrb[35].mxu0 }
 0x13f   : > { %v4681_v13 = vpop.f32.mrb[35].mxu1  ;;  %v4683_v38 = vpop.eup %3364  ;;  %3384 = vrcp.f32 %v1578_v21  ;;  %v1581_v4 = vadd.f32 1.0, %v3363_v20  ;;  %v2880_v20 = vmul.f32 -1.442695, %v4582_v51 }
 0x140   : > { %5321 = vst [vmem:[#allocation44_spill] sm:$0xff] %v4683_v38  ;;  %v3367_v17 = vpop.eup %3366  ;;  %3386 = vpow2.f32 %v2879_v49  ;;  %v4687_v36 = vpop.f32.mrb[36].mxu0 }
 0x141   : > { %v3369_v57 = vpop.eup %3368  ;;  %v1797_v26 = vmul.f32 %v3367_v17, %v4528_v48  ;;  %3388 = vrcp.f32 %v1510_v12  ;;  %v4689_v55 = vpop.f32.mrb[36].mxu1 }
 0x142   : > { %5322 = vst [vmem:[#allocation45_spill] sm:$0xff] %v4689_v55  ;;  %v3371_v10 = vpop.eup %3370  ;;  %3390 = vrcp.f32 %v1581_v4  ;;  %v1512_v54 = vadd.f32 1.0, %v3369_v57  ;;  %v4691_v19 = vpop.f32.mrb[37].mxu0 }
 0x143   : > { %5323 = vst [vmem:[#allocation46_spill] sm:$0xff] %v4691_v19  ;;  %v3373_v38 = vpop.eup %3372  ;;  %v1490_v21 = vadd.f32 1.0, %v3371_v10  ;;  %3392 = vpow2.f32 %v2857_v50  ;;  %v4694_v30 = vmul.f32 %v1797_v26, %v796_v0  ;;  %v4696_v49 = vpop.f32.mrb[37].mxu1  ;;  %v2882_v50 = vmul.f32 -1.442695, %v4590_v1 }
 0x144   : > { %v4698_v48 = vpop.eup %3374  ;;  %3394 = vrcp.f32 %v1512_v54  ;;  %v1513_v12 = vadd.f32 1.0, %v3373_v38  ;;  %v4700_v55 = vpop.f32.mrb[38].mxu0  ;;  %v2860_v38 = vmul.f32 -1.442695, %v4592_v41 }
 0x145   : > { %5324 = vst [vmem:[#allocation47_spill] sm:$0xff] %v4694_v30  ;;  %5325 = vst [vmem:[#allocation48_spill] sm:$0xff] %v4698_v48  ;;  %v3377_v17 = vpop.eup %3376  ;;  %3396 = vrcp.f32 %v1490_v21  ;;  %v4702_v4 = vpop.f32.mrb[38].mxu1 }
 0x146   : > { %5326 = vst [vmem:[#allocation49_spill] sm:$0xff] %v4700_v55  ;;  %5327 = vst [vmem:[#allocation50_spill] sm:$0xff] %v4702_v4  ;;  %v3379_v57 = vpop.eup %3378  ;;  %3398 = vrcp.f32 %v1513_v12  ;;  %v1515_v10 = vadd.f32 1.0, %v3377_v17  ;;  %v4705_v51 = vpop.f32.mrb[39].mxu0 }
 0x147   : > { %5328 = vst [vmem:[#allocation51_spill] sm:$0xff] %v4705_v51  ;;  %v4707_v0 = vpop.eup %3380  ;;  %v1493_v26 = vadd.f32 1.0, %v3379_v57  ;;  %3400 = vpow2.f32 %v2880_v20  ;;  %v4709_v48 = vpop.f32.mrb[39].mxu1 }
 0x148   : > { %5329 = vst [vmem:[#allocation52_spill] sm:$0xff] %v4707_v0  ;;  %v3383_v54 = vpop.eup %3382  ;;  %3402 = vrcp.f32 %v1515_v10  ;;  %v4714_v12 = vpop.f32.mrb[40].mxu0  ;;  %v2883_v0 = vmul.f32 -1.442695, %v4598_v58 }
 0x149   : > { %v4712_v21 = vpop.eup %3384  ;;  %3404 = vrcp.f32 %v1493_v26  ;;  %v1516_v30 = vadd.f32 1.0, %v3383_v54  ;;  %5331 = vst [vmem:[#allocation54_spill] sm:$0xff] %v4714_v12  ;;  %v4716_v17 = vpop.f32.mrb[40].mxu1 }
 0x14a   : > { %5330 = vst [vmem:[#allocation53_spill] sm:$0xff] %v4712_v21  ;;  %5332 = vst [vmem:[#allocation55_spill] sm:$0xff] %v4716_v17  ;;  %v3387_v4 = vpop.eup %3386  ;;  %3406 = vpow2.f32 %v2882_v50  ;;  %v4719_v57 = vpop.f32.mrb[41].mxu0  ;;  %v2885_v21 = vmul.f32 -1.442695, %v4603_v42 }
 0x14b   : > { %5333 = vst [vmem:[#allocation56_spill] sm:$0xff] %v4719_v57  ;;  %v4721_v20 = vpop.f32.mrb[41].mxu1  ;;  %v4723_v51 = vpop.eup %3388  ;;  %3408 = vrcp.f32 %v1516_v30  ;;  %v1518_v10 = vadd.f32 1.0, %v3387_v4  ;;  %v2863_v17 = vmul.f32 -1.442695, %v4605_v31 }
 0x14c   : > { %5334 = vst [vmem:[#allocation57_spill] sm:$0xff] %v4723_v51  ;;  %v4726_v26 = vpop.eup %3390  ;;  %3410 = vpow2.f32 %v2860_v38  ;;  %v4729_v50 = vpop.f32.mrb[42].mxu0  ;;  %v2886_v51 = vmul.f32 -1.442695, %v4608_v2  ;;  %v2888_v38 = vmul.f32 -1.442695, %v4616_v52 }
 0x14d   : > { %5335 = vst [vmem:[#allocation58_spill] sm:$0xff] %v4726_v26  ;;  %v3393_v54 = vpop.eup %3392  ;;  %3412 = vrcp.f32 %v1518_v10  ;;  %5336 = vst [vmem:[#allocation59_spill] sm:$0xff] %v4729_v50  ;;  %v4731_v58 = vpop.f32.mrb[42].mxu1 }
 0x14e   : > { %5337 = vst [vmem:[#allocation60_spill] sm:$0xff] %v4731_v58  ;;  %v3395_v57 = vpop.eup %3394  ;;  %v1496_v12 = vadd.f32 1.0, %v3393_v54  ;;  %3414 = vpow2.f32 %v2883_v0  ;;  %v4734_v30 = vpop.f32.mrb[43].mxu0  ;;  %v2866_v54 = vmul.f32 -1.442695, %v4618_v16 }
 0x14f   : > { %5338 = vst [vmem:[#allocation61_spill] sm:$0xff] %v4734_v30  ;;  %v3397_v4 = vpop.eup %3396  ;;  %v1800_v55 = vmul.f32 %v3395_v57, %v4546_v9  ;;  %3416 = vpow2.f32 %v2885_v21  ;;  %v4738_v10 = vpop.f32.mrb[43].mxu1  ;;  %v2889_v57 = vmul.f32 -1.442695, %v4620_v53 }
 0x150   : > { %v4740_v26 = vpop.eup %3398  ;;  %3418 = vrcp.f32 %v1496_v12  ;;  %v4746_v2 = vpop.f32.mrb[44].mxu0 }
 0x151   : > { %5339 = vst [vmem:[#allocation62_spill] sm:$0xff] %v4740_v26  ;;  %v3401_v50 = vpop.eup %3400  ;;  %3420 = vpow2.f32 %v2863_v17  ;;  %v4744_v0 = vmul.f32 %v1800_v55, %v4666_v18  ;;  %5341 = vst [vmem:[#allocation64_spill] sm:$0xff] %v4746_v2  ;;  %v4748_v30 = vpop.f32.mrb[44].mxu1  ;;  %v2891_v55 = vmul.f32 -1.442695, %v4628_v62 }
 0x152   : > { %5342 = vst [vmem:[#allocation65_spill] sm:$0xff] %v4748_v30  ;;  %v3403_v9 = vpop.eup %3402  ;;  %v1519_v21 = vadd.f32 1.0, %v3401_v50  ;;  %3422 = vpow2.f32 %v2886_v51  ;;  %v4751_v58 = vpop.f32.mrb[45].mxu0 }
 0x153   : > { %5340 = vst [vmem:[#allocation63_spill] sm:$0xff] %v4744_v0  ;;  %5343 = vst [vmem:[#allocation66_spill] sm:$0xff] %v4751_v58  ;;  %v3405_v26 = vpop.eup %3404  ;;  %v1803_v12 = vmul.f32 %v3403_v9, %v4562_v37  ;;  %3424 = vpow2.f32 %v2888_v38  ;;  %v4754_v17 = vpop.f32.mrb[45].mxu1  ;;  %v2869_v37 = vmul.f32 -1.442695, %v4630_v3 }
 0x154   : > { %v3407_v19 = vpop.eup %3406  ;;  %3426 = vrcp.f32 %v1519_v21  ;;  %v4762_v50 = vpop.f32.mrb[46].mxu0 }
 0x155   : > { %v4757_v18 = vpop.eup %3408  ;;  %v1521_v30 = vadd.f32 1.0, %v3407_v19  ;;  %3428 = vpow2.f32 %v2866_v54  ;;  %v4760_v51 = vmul.f32 %v1803_v12, %v4681_v13  ;;  %5345 = vst [vmem:[#allocation68_spill] sm:$0xff] %v4762_v50  ;;  %v4764_v53 = vpop.f32.mrb[46].mxu1  ;;  %v1777_v13 = vmul.f32 %v4543_v44, %v4408_v15 }
 0x156   : > { %5346 = vst [vmem:[#allocation69_spill] sm:$0xff] %v4764_v53  ;;  %v3411_v58 = vpop.eup %3410  ;;  %3430 = vpow2.f32 %v2889_v57  ;;  %v4767_v38 = vpop.f32.mrb[47].mxu0  ;;  %v1778_v53 = vmul.f32 %v3397_v4, %v4548_v56  ;;  %v2892_v50 = vmul.f32 -1.442695, %v4634_v11  ;;  %v1780_v4 = vmul.f32 %v4570_v47, %v4424_v24 }
 0x157   : > { %5344 = vst [vmem:[#allocation67_spill] sm:$0xff] %v4760_v51  ;;  %5347 = vst [vmem:[#allocation70_spill] sm:$0xff] %v4767_v38  ;;  %v4769_v9 = vpop.f32.mrb[47].mxu1  ;;  %v3413_v21 = vpop.eup %3412  ;;  %3432 = vrcp.f32 %v1521_v30  ;;  %v1499_v2 = vadd.f32 1.0, %v3411_v58 }
 0x158   : > { %v3415_v19 = vpop.eup %3414  ;;  %v1806_v54 = vmul.f32 %v3413_v21, %v4578_v32  ;;  %3434 = vpow2.f32 %v2891_v55  ;;  %v4776_v38 = vpop.f32.mrb[48].mxu1 }
 0x159   : > { %v3417_v12 = vpop.eup %3416  ;;  %3436 = vrcp.f32 %v1499_v2  ;;  %v1522_v57 = vadd.f32 1.0, %v3415_v19  ;;  %5348 = vst [vmem:[#allocation71_spill] sm:$0xff] %v4776_v38  ;;  %v1009_v51 = vpop.f32.mrb[48].mxu0 }
 0x15a   : > { %v3419_v0 = vpop.eup %3418  ;;  %v1524_v30 = vadd.f32 1.0, %v3417_v12  ;;  %3438 = vpow2.f32 %v2869_v37  ;;  %v4779_v58 = vmul.f32 %v1806_v54, %v4696_v49  ;;  %v4781_v15 = vpop.f32.mrb[49].mxu1  ;;  %v1873_v55 = vmul.f32 %v1777_v13, %v1009_v51 }
 0x15b   : > { %v1011_v44 = vpop.f32.mrb[49].mxu0  ;;  %v3421_v32 = vpop.eup %3420  ;;  %3440 = vrcp.f32 %v1522_v57  ;;  %v1781_v12 = vmul.f32 %v3405_v26, %v4564_v6  ;;  %v2894_v49 = vmul.f32 -1.442695, %v4641_v27  ;;  %v1783_v57 = vmul.f32 %v4586_v40, %v4443_v34 }
 0x15c   : > { %v1874_v56 = vmul.f32 %v1778_v53, %v1011_v44  ;;  %v3423_v2 = vpop.eup %3422  ;;  %3442 = vrcp.f32 %v1524_v30  ;;  %v1502_v21 = vadd.f32 1.0, %v3421_v32  ;;  %2112 = vmatprep.mubr.f32.mxu1 %v1873_v55  ;;  %v4787_v54 = vpop.f32.mrb[50].mxu1  ;;  %v2872_v44 = vmul.f32 -1.442695, %v4643_v35 }
 0x15d   : > { %v3425_v19 = vpop.eup %3424  ;;  %v1525_v37 = vadd.f32 1.0, %v3423_v2  ;;  %3444 = vpow2.f32 %v2892_v50  ;;  %v1015_v38 = vpop.f32.mrb[50].mxu0  ;;  %2113 = vmatmul.mubr.f32.vlgmr.msra.gmra.mrb[80].mxu1 %v4559_v33  ;;  %v2895_v34 = vmul.f32 -1.442695, %v4648_v8 }
 0x15e   : > { %3031 = vmatprep.mubr.f32.mxu0 %v1874_v56  ;;  %v4789_v51 = vpop.eup %3426  ;;  %3446 = vrcp.f32 %v1502_v21  ;;  %v1527_v53 = vadd.f32 1.0, %v3425_v19  ;;  %v1876_v13 = vmul.f32 %v1780_v4, %v1015_v38  ;;  %v4792_v24 = vpop.f32.mrb[51].mxu1  ;;  %v1784_v38 = vmul.f32 %v3419_v0, %v4580_v5 }
 0x15f   : > { %v1017_v47 = vpop.f32.mrb[51].mxu0  ;;  %v3429_v6 = vpop.eup %3428  ;;  %3448 = vrcp.f32 %v1525_v37 }
 0x160   : > { %v1877_v26 = vmul.f32 %v1781_v12, %v1017_v47  ;;  %v3431_v50 = vpop.eup %3430  ;;  %3450 = vrcp.f32 %v1527_v53  ;;  %v1505_v30 = vadd.f32 1.0, %v3429_v6  ;;  %2117 = vmatprep.mubr.f32.mxu1 %v1876_v13  ;;  %v4798_v33 = vpop.f32.mrb[52].mxu1  ;;  %v2875_v6 = vmul.f32 -1.442695, %v4661_v59 }
 0x161   : > { %v3433_v32 = vpop.eup %3432  ;;  %v1528_v55 = vadd.f32 1.0, %v3431_v50  ;;  %3452 = vpow2.f32 %v2894_v49  ;;  %v1021_v56 = vpop.f32.mrb[52].mxu0  ;;  %2118 = vmatmul.mubr.f32.gmra.mrb[82].mxu1 %v4573_v61  ;;  %v1786_v49 = vmul.f32 %v4626_v29, %v4468_v45 }
 0x162   : > { %3032 = vmatmul.mubr.f32.vlgmr.msra.gmra.mrb[112].mxu0 %v1877_v26  ;;  %v3435_v2 = vpop.eup %3434  ;;  %v1809_v4 = vmul.f32 %v3433_v32, %v4590_v1  ;;  %3454 = vrcp.f32 %v1505_v30  ;;  %v1879_v40 = vmul.f32 %v1783_v57, %v1021_v56  ;;  %v4803_v21 = vpop.f32.mrb[53].mxu1  ;;  %v2897_v1 = vmul.f32 -1.442695, %v4659_v22 }
 0x163   : > { %v1023_v19 = vpop.f32.mrb[53].mxu0  ;;  %v3437_v12 = vpop.eup %3436  ;;  %3456 = vrcp.f32 %v1528_v55  ;;  %v1530_v5 = vadd.f32 1.0, %v3435_v2  ;;  %v1789_v55 = vmul.f32 %v4645_v46, %v4488_v60  ;;  %v2900_v2 = vmul.f32 -1.442695, %v4675_v39 }
 0x164   : > { %v1880_v0 = vmul.f32 %v1784_v38, %v1023_v19  ;;  %v3439_v37 = vpop.eup %3438  ;;  %3458 = vpow2.f32 %v2872_v44  ;;  %v4809_v53 = vmul.f32 %v1809_v4, %v4709_v48  ;;  %2122 = vmatprep.mubr.f32.mxu1 %v1879_v40  ;;  %v1787_v61 = vmul.f32 %v3437_v12, %v4592_v41  ;;  %v4815_v26 = vpop.f32.mrb[54].mxu1 }
 0x165   : > { %v4811_v13 = vpop.eup %3440  ;;  %3460 = vrcp.f32 %v1530_v5  ;;  %v1508_v47 = vadd.f32 1.0, %v3439_v37  ;;  %v1027_v50 = vpop.f32.mrb[54].mxu0  ;;  %2123 = vmatmul.mubr.f32.gmra.mrb[84].mxu1 %v4584_v7  ;;  %v2898_v41 = vmul.f32 -1.442695, %v4664_v25  ;;  %v2901_v37 = vmul.f32 -1.442695, %v4679_v63 }
 0x166   : > { %3034 = vmatprep.mubr.f32.mxu0 %v1880_v0  ;;  %v3443_v45 = vpop.eup %3442  ;;  %3462 = vpow2.f32 %v2895_v34  ;;  %v1882_v29 = vmul.f32 %v1786_v49, %v1027_v50  ;;  %v4818_v48 = vpop.f32.mrb[55].mxu1 }
 0x167   : > { %v1029_v57 = vpop.f32.mrb[55].mxu0  ;;  %v3445_v30 = vpop.eup %3444  ;;  %v1812_v44 = vmul.f32 %v3443_v45, %v4603_v42  ;;  %3464 = vrcp.f32 %v1508_v47  ;;  %v2878_v42 = vmul.f32 -1.442695, %v4677_v43  ;;  %v2903_v47 = vmul.f32 -1.442695, %v4687_v36 }
 0x168   : > { %v1883_v32 = vmul.f32 %v1787_v61, %v1029_v57  ;;  %v3447_v38 = vpop.eup %3446  ;;  %v1531_v56 = vadd.f32 1.0, %v3445_v30  ;;  %3466 = vpow2.f32 %v2897_v1  ;;  %2127 = vmatprep.mubr.f32.mxu1 %v1882_v29  ;;  %v4832_v40 = vpop.f32.mrb[56].mxu1  ;;  %v1792_v1 = vmul.f32 %v4656_v23, %v4500_v14  ;;  %v5349_v23 = vld [vmem:[#allocation45_spill] sm:$0xff]  ;;  %v5350_v30 = vld [vmem:[#allocation34_spill] sm:$0xff] }
 0x169   : > { %v4825_v7 = vpop.eup %3448  ;;  %v1790_v4 = vmul.f32 %v3447_v38, %v4605_v31  ;;  %3468 = vpow2.f32 %v2875_v6  ;;  %v4830_v34 = vmul.f32 %v1812_v44, %v4721_v20  ;;  %v1033_v19 = vpop.f32.mrb[56].mxu0  ;;  %2128 = vmatmul.mubr.f32.gmra.mrb[86].mxu1 %v4600_v28  ;;  %v2881_v14 = vmul.f32 -1.442695, %v5349_v23 }
 0x16a   : > { %3035 = vmatmul.mubr.f32.gmra.mrb[114].mxu0 %v1883_v32  ;;  %v3451_v60 = vpop.eup %3450  ;;  %3470 = vrcp.f32 %v1531_v56  ;;  %v1885_v46 = vmul.f32 %v1789_v55, %v1033_v19  ;;  %v4835_v12 = vpop.f32.mrb[57].mxu1  ;;  %v5352_v56 = vld [vmem:[#allocation46_spill] sm:$0xff]  ;;  %v5354_v19 = vld [vmem:[#allocation44_spill] sm:$0xff] }
 0x16b   : > { %v1035_v5 = vpop.f32.mrb[57].mxu0  ;;  %v3453_v0 = vpop.eup %3452  ;;  %v1815_v31 = vmul.f32 %v3451_v60, %v4616_v52  ;;  %3472 = vpow2.f32 %v2898_v41 }
 0x16c   : > { %v1886_v20 = vmul.f32 %v1790_v4, %v1035_v5  ;;  %v3455_v49 = vpop.eup %3454  ;;  %v1533_v61 = vadd.f32 1.0, %v3453_v0  ;;  %3474 = vpow2.f32 %v2900_v2  ;;  %2132 = vmatprep.mubr.f32.mxu1 %v1885_v46  ;;  %v4848_v50 = vpop.f32.mrb[58].mxu1  ;;  %v2904_v2 = vmul.f32 -1.442695, %v5352_v56 }
 0x16d   : > { %v4842_v28 = vpop.eup %3456  ;;  %v1793_v6 = vmul.f32 %v3455_v49, %v4618_v16  ;;  %3476 = vpow2.f32 %v2878_v42  ;;  %v4846_v52 = vmul.f32 %v1815_v31, %v4738_v10  ;;  %v1039_v45 = vpop.f32.mrb[58].mxu0  ;;  %2133 = vmatmul.mubr.f32.gmra.mrb[88].mxu1 %v5350_v30  ;;  %v5353_v42 = vld [vmem:[#allocation19_spill] sm:$0xff]  ;;  %v5358_v30 = vld [vmem:[#allocation22_spill] sm:$0xff] }
 0x16e   : > { %3037 = vmatprep.mubr.f32.mxu0 %v1886_v20  ;;  %v3459_v29 = vpop.eup %3458  ;;  %3478 = vrcp.f32 %v1533_v61  ;;  %v1888_v57 = vmul.f32 %v1792_v1, %v1039_v45  ;;  %v4852_v44 = vpop.f32.mrb[59].mxu1  ;;  %v1795_v60 = vmul.f32 %v5354_v19, %v5353_v42  ;;  %v5355_v20 = vld [vmem:[#allocation37_spill] sm:$0xff]  ;;  %v5361_v42 = vld [vmem:[#allocation40_spill] sm:$0xff] }
 0x16f   : > { %5351 = vst [vmem:[#allocation45_spill] sm:$0xff] %v4852_v44  ;;  %v1041_v41 = vpop.f32.mrb[59].mxu0  ;;  %v3461_v32 = vpop.eup %3460  ;;  %v1511_v16 = vadd.f32 1.0, %v3459_v29  ;;  %3480 = vpow2.f32 %v2901_v37 }
 0x170   : > { %v1889_v38 = vmul.f32 %v1793_v6, %v1041_v41  ;;  %v3463_v10 = vpop.eup %3462  ;;  %v1818_v55 = vmul.f32 %v3461_v32, %v4628_v62  ;;  %3482 = vpow2.f32 %v2903_v47  ;;  %2137 = vmatprep.mubr.f32.mxu1 %v1888_v57  ;;  %v4858_v5 = vpop.f32.mrb[60].mxu1  ;;  %v5357_v6 = vld [vmem:[#allocation49_spill] sm:$0xff] }
 0x171   : > { %v3465_v4 = vpop.eup %3464  ;;  %3484 = vrcp.f32 %v1511_v16  ;;  %v1534_v46 = vadd.f32 1.0, %v3463_v10  ;;  %v1045_v0 = vpop.f32.mrb[60].mxu0  ;;  %2138 = vmatmul.mubr.f32.gmra.mrb[90].mxu1 %v5355_v20  ;;  %v2906_v45 = vmul.f32 -1.442695, %v5357_v6  ;;  %v5359_v41 = vld [vmem:[#allocation57_spill] sm:$0xff] }
 0x172   : > { %3038 = vmatmul.mubr.f32.gmra.mrb[116].mxu0 %v1889_v38  ;;  %v3467_v31 = vpop.eup %3466  ;;  %v1796_v37 = vmul.f32 %v3465_v4, %v4630_v3  ;;  %3486 = vpow2.f32 %v2881_v14  ;;  %v4862_v62 = vmul.f32 %v1818_v55, %v4754_v17  ;;  %v4865_v49 = vpop.f32.mrb[61].mxu1  ;;  %v1891_v29 = vmul.f32 %v1795_v60, %v1045_v0  ;;  %v5364_v20 = vld [vmem:[#allocation25_spill] sm:$0xff] }
 0x173   : > { %5356 = vst [vmem:[#allocation34_spill] sm:$0xff] %v4865_v49  ;;  %v1047_v1 = vpop.f32.mrb[61].mxu0  ;;  %v3469_v61 = vpop.eup %3468  ;;  %3488 = vrcp.f32 %v1534_v46  ;;  %v1536_v47 = vadd.f32 1.0, %v3467_v31  ;;  %v1798_v3 = vmul.f32 %v5359_v41, %v5358_v30  ;;  %v5366_v30 = vld [vmem:[#allocation6_spill] sm:$0xff]  ;;  %v5367_v41 = vld [vmem:[#allocation24_spill] sm:$0xff] }
 0x174   : > { %v4868_v57 = vpop.eup %3470  ;;  %v1514_v14 = vadd.f32 1.0, %v3469_v61  ;;  %3490 = vpow2.f32 %v2904_v2  ;;  %v1892_v17 = vmul.f32 %v1796_v37, %v1047_v1  ;;  %2142 = vmatprep.mubr.f32.mxu1 %v1891_v29  ;;  %v4872_v16 = vpop.f32.mrb[62].mxu1  ;;  %v5363_v2 = vld [vmem:[#allocation50_spill] sm:$0xff] }
 0x175   : > { %v3473_v32 = vpop.eup %3472  ;;  %3492 = vrcp.f32 %v1536_v47  ;;  %5360 = vst [vmem:[#allocation19_spill] sm:$0xff] %v4872_v16  ;;  %v1051_v38 = vpop.f32.mrb[62].mxu0  ;;  %2143 = vmatmul.mubr.f32.gmra.mrb[92].mxu1 %v5361_v42  ;;  %v2884_v31 = vmul.f32 -1.442695, %v5363_v2  ;;  %v5365_v1 = vld [vmem:[#allocation62_spill] sm:$0xff] }
 0x176   : > { %v3475_v10 = vpop.eup %3474  ;;  %3494 = vrcp.f32 %v1514_v14  ;;  %v1537_v55 = vadd.f32 1.0, %v3473_v32  ;;  %v1894_v4 = vmul.f32 %v1798_v3, %v1051_v38  ;;  %3040 = vmatprep.mubr.f32.mxu0 %v1892_v17  ;;  %v4875_v19 = vpop.f32.mrb[63].mxu1  ;;  %v1801_v61 = vmul.f32 %v5365_v1, %v5364_v20  ;;  %v5370_v20 = vld [vmem:[#allocation47_spill] sm:$0xff] }
 0x177   : > { %5362 = vst [vmem:[#allocation44_spill] sm:$0xff] %v4875_v19  ;;  %v1053_v60 = vpop.f32.mrb[63].mxu0  ;;  %v3477_v46 = vpop.eup %3476  ;;  %v1539_v0 = vadd.f32 1.0, %v3475_v10  ;;  %3496 = vpow2.f32 %v2906_v45  ;;  %v1848_v3 = vmul.f32 %v5367_v41, %v5366_v30  ;;  %v5369_v10 = vld [vmem:[#allocation51_spill] sm:$0xff]  ;;  %v5373_v41 = vld [vmem:[#allocation8_spill] sm:$0xff] }
 0x178   : > { %v3479_v37 = vpop.eup %3478  ;;  %3498 = vrcp.f32 %v1537_v55  ;;  %v1517_v47 = vadd.f32 1.0, %v3477_v46  ;;  %2147 = vmatprep.mubr.f32.mxu1 %v1894_v4  ;;  %v4883_v17 = vpop.f32.mrb[64].mxu1  ;;  %v2907_v42 = vmul.f32 -1.442695, %v5369_v10  ;;  %v5375_v10 = vld [vmem:[#allocation27_spill] sm:$0xff] }
 0x179   : > { %v3481_v29 = vpop.eup %3480  ;;  %v1821_v14 = vmul.f32 %v3479_v37, %v4641_v27  ;;  %3500 = vrcp.f32 %v1539_v0  ;;  %5368 = vst [vmem:[#allocation37_spill] sm:$0xff] %v4883_v17  ;;  %v1057_v32 = vpop.f32.mrb[64].mxu0  ;;  %2148 = vmatmul.mubr.f32.gmra.mrb[94].mxu1 %v5370_v20 }
 0x17a   : > { %v3483_v45 = vpop.eup %3482  ;;  %3502 = vrcp.f32 %v1517_v47  ;;  %v1540_v38 = vadd.f32 1.0, %v3481_v29  ;;  %v1897_v19 = vmul.f32 %v1801_v61, %v1057_v32  ;;  %v898_v55 = vpop.f32.mrb[65].mxu1  ;;  %v5372_v47 = vld [vmem:[#allocation54_spill] sm:$0xff]  ;;  %v5374_v32 = vld [vmem:[#allocation28_spill] sm:$0xff] }
 0x17b   : > { %v1059_v4 = vpop.f32.mrb[65].mxu0  ;;  %v3485_v46 = vpop.eup %3484  ;;  %v1542_v1 = vadd.f32 1.0, %v3483_v45  ;;  %3504 = vpow2.f32 %v2884_v31  ;;  %v4888_v30 = vmul.f32 %v1821_v14, %v4769_v9  ;;  %v4890_v27 = vmul.f32 %v1848_v3, %v898_v55  ;;  %v5378_v55 = vld [vmem:[#allocation56_spill] sm:$0xff] }
 0x17c   : > { %v3487_v0 = vpop.eup %3486  ;;  %v1799_v37 = vmul.f32 %v3485_v46, %v4643_v35  ;;  %3506 = vrcp.f32 %v1540_v38  ;;  %v2909_v29 = vmul.f32 -1.442695, %v5372_v47  ;;  %2152 = vmatprep.mubr.f32.mxu1 %v1897_v19  ;;  %v1851_v20 = vmul.f32 %v5374_v32, %v5373_v41  ;;  %v4900_v14 = vpop.f32.mrb[66].mxu1  ;;  %v5377_v35 = vld [vmem:[#allocation55_spill] sm:$0xff] }
 0x17d   : > { %5371 = vst [vmem:[#allocation49_spill] sm:$0xff] %v4890_v27  ;;  %v4894_v61 = vpop.eup %3488  ;;  %v1804_v31 = vmul.f32 %v4757_v18, %v5375_v10  ;;  %3508 = vrcp.f32 %v1542_v1  ;;  %v1520_v9 = vadd.f32 1.0, %v3487_v0  ;;  %5376 = vst [vmem:[#allocation22_spill] sm:$0xff] %v4900_v14  ;;  %v1063_v3 = vpop.f32.mrb[66].mxu0  ;;  %v2887_v38 = vmul.f32 -1.442695, %v5377_v35 }
 0x17e   : > { %v3491_v45 = vpop.eup %3490  ;;  %3510 = vpow2.f32 %v2907_v42  ;;  %v2910_v46 = vmul.f32 -1.442695, %v5378_v55  ;;  %v1895_v19 = vmul.f32 %v1799_v37, %v1053_v60  ;;  %v5379_v27 = vld [vmem:[#allocation63_spill] sm:$0xff]  ;;  %v904_v49 = vpop.f32.mrb[67].mxu1  ;;  %v5381_v0 = vld [vmem:[#allocation10_spill] sm:$0xff]  ;;  %v5382_v14 = vld [vmem:[#allocation33_spill] sm:$0xff] }
 0x17f   : > { %2153 = vmatmul.mubr.f32.gmra.mrb[96].mxu1 %v5379_v27  ;;  %v1065_v56 = vpop.f32.mrb[67].mxu0  ;;  %v3493_v41 = vpop.eup %3492  ;;  %3512 = vrcp.f32 %v1520_v9  ;;  %v1543_v32 = vadd.f32 1.0, %v3491_v45  ;;  %v1900_v18 = vmul.f32 %v1804_v31, %v1063_v3  ;;  %v4905_v10 = vmul.f32 %v1851_v20, %v904_v49  ;;  %v5383_v60 = vld [vmem:[#allocation29_spill] sm:$0xff]  ;;  %v5384_v9 = vld [vmem:[#allocation59_spill] sm:$0xff] }
 0x180   : > { %v3495_v1 = vpop.eup %3494  ;;  %v1854_v17 = vmul.f32 %v5382_v14, %v5381_v0  ;;  %v1824_v42 = vmul.f32 %v3493_v41, %v4659_v22  ;;  %3514 = vpow2.f32 %v2909_v29  ;;  %3041 = vmatmul.mubr.f32.gmra.mrb[118].mxu0 %v1895_v19  ;;  %v1807_v27 = vmul.f32 %v4789_v51, %v5383_v60  ;;  %v4914_v49 = vpop.f32.mrb[68].mxu1  ;;  %v5386_v22 = vld [vmem:[#allocation60_spill] sm:$0xff]  ;;  %v5387_v19 = vld [vmem:[#allocation67_spill] sm:$0xff] }
 0x181   : > { %5380 = vst [vmem:[#allocation57_spill] sm:$0xff] %v4905_v10  ;;  %v3497_v55 = vpop.eup %3496  ;;  %v1802_v37 = vmul.f32 %v3495_v1, %v4661_v59  ;;  %3516 = vrcp.f32 %v1543_v32  ;;  %v2912_v45 = vmul.f32 -1.442695, %v5384_v9  ;;  %2157 = vmatprep.mubr.f32.mxu1 %v1900_v18  ;;  %5385 = vst [vmem:[#allocation40_spill] sm:$0xff] %v4914_v49  ;;  %v1069_v20 = vpop.f32.mrb[68].mxu0  ;;  %v5388_v32 = vld [vmem:[#allocation61_spill] sm:$0xff] }
 0x182   : > { %v4916_v31 = vpop.eup %3498  ;;  %v1545_v14 = vadd.f32 1.0, %v3497_v55  ;;  %3518 = vpow2.f32 %v2887_v38  ;;  %v2890_v29 = vmul.f32 -1.442695, %v5386_v22  ;;  %v4920_v3 = vmul.f32 %v1824_v42, %v4781_v15  ;;  %v910_v51 = vpop.f32.mrb[69].mxu1  ;;  %v5389_v10 = vld [vmem:[#allocation12_spill] sm:$0xff]  ;;  %v5390_v49 = vld [vmem:[#allocation41_spill] sm:$0xff] }
 0x183   : > { %2158 = vmatmul.mubr.f32.gmra.mrb[98].mxu1 %v5387_v19  ;;  %v1071_v59 = vpop.f32.mrb[69].mxu0  ;;  %v3501_v41 = vpop.eup %3500  ;;  %3520 = vpow2.f32 %v2910_v46  ;;  %v2913_v18 = vmul.f32 -1.442695, %v5388_v32  ;;  %v1898_v1 = vmul.f32 %v1802_v37, %v1059_v4  ;;  %v1903_v0 = vmul.f32 %v1807_v27, %v1069_v20  ;;  %v5392_v42 = vld [vmem:[#allocation31_spill] sm:$0xff]  ;;  %v5393_v46 = vld [vmem:[#allocation64_spill] sm:$0xff] }
 0x184   : > { %v3503_v60 = vpop.eup %3502  ;;  %v1857_v55 = vmul.f32 %v5390_v49, %v5389_v10  ;;  %v1827_v38 = vmul.f32 %v3501_v41, %v4675_v39  ;;  %3522 = vrcp.f32 %v1545_v14  ;;  %v4927_v16 = vmul.f32 %v1854_v17, %v910_v51  ;;  %v4933_v4 = vpop.f32.mrb[70].mxu1  ;;  %v5394_v17 = vld [vmem:[#allocation65_spill] sm:$0xff] }
 0x185   : > { %v3505_v15 = vpop.eup %3504  ;;  %v1810_v19 = vmul.f32 %v4811_v13, %v5392_v42  ;;  %v1805_v44 = vmul.f32 %v3503_v60, %v4677_v43  ;;  %3524 = vpow2.f32 %v2912_v45  ;;  %v2915_v32 = vmul.f32 -1.442695, %v5393_v46  ;;  %3043 = vmatprep.mubr.f32.mxu0 %v1898_v1  ;;  %2162 = vmatprep.mubr.f32.mxu1 %v1903_v0  ;;  %v1075_v27 = vpop.f32.mrb[70].mxu0  ;;  %v5395_v1 = vld [vmem:[#allocation66_spill] sm:$0xff] }
 0x186   : > { %5391 = vst [vmem:[#allocation50_spill] sm:$0xff] %v4927_v16  ;;  %v4935_v10 = vpop.eup %3506  ;;  %v1523_v39 = vadd.f32 1.0, %v3505_v15  ;;  %3526 = vpow2.f32 %v2890_v29  ;;  %v2893_v37 = vmul.f32 -1.442695, %v5394_v17  ;;  %v4939_v49 = vmul.f32 %v1827_v38, %v4792_v24  ;;  %v916_v43 = vpop.f32.mrb[71].mxu1  ;;  %v5396_v24 = vld [vmem:[#allocation14_spill] sm:$0xff] }
 0x187   : > { %2163 = vmatmul.mubr.f32.gmra.mrb[100].mxu1 %v4779_v58  ;;  %v4942_v13 = vpop.f32.mrb[71].mxu0  ;;  %v3509_v45 = vpop.eup %3508  ;;  %3528 = vpow2.f32 %v2913_v18  ;;  %v1901_v20 = vmul.f32 %v1805_v44, %v1065_v56  ;;  %v1906_v14 = vmul.f32 %v1810_v19, %v1075_v27  ;;  %v2916_v29 = vmul.f32 -1.442695, %v5395_v1  ;;  %v5397_v38 = vld [vmem:[#allocation43_spill] sm:$0xff]  ;;  %v5398_v58 = vld [vmem:[#allocation32_spill] sm:$0xff] }
 0x188   : > { %v3511_v51 = vpop.eup %3510  ;;  %v1830_v41 = vmul.f32 %v3509_v45, %v4687_v36  ;;  %3530 = vrcp.f32 %v1523_v39  ;;  %v4946_v0 = vmul.f32 %v1857_v55, %v916_v43  ;;  %v1860_v15 = vmul.f32 %v5397_v38, %v5396_v24  ;;  %v4952_v44 = vpop.f32.mrb[72].mxu1  ;;  %v5399_v55 = vld [vmem:[#allocation68_spill] sm:$0xff]  ;;  %v5403_v38 = vld [vmem:[#allocation69_spill] sm:$0xff] }
 0x189   : > { %v3513_v60 = vpop.eup %3512  ;;  %v1813_v42 = vmul.f32 %v4825_v7, %v5398_v58  ;;  %v1546_v16 = vadd.f32 1.0, %v3511_v51  ;;  %3532 = vpow2.f32 %v2915_v32  ;;  %3044 = vmatmul.mubr.f32.gmra.mrb[120].mxu0 %v1901_v20  ;;  %2167 = vmatprep.mubr.f32.mxu1 %v1906_v14  ;;  %v1081_v56 = vpop.f32.mrb[72].mxu0  ;;  %v2918_v19 = vmul.f32 -1.442695, %v5399_v55 }
 0x18a   : > { %v3515_v36 = vpop.eup %3514  ;;  %v1808_v18 = vmul.f32 %v3513_v60, %v5349_v23  ;;  %3534 = vpow2.f32 %v2893_v37  ;;  %v4957_v27 = vmul.f32 %v1830_v41, %v4803_v21  ;;  %v922_v39 = vpop.f32.mrb[73].mxu1  ;;  %v5400_v23 = vld [vmem:[#allocation35_spill] sm:$0xff]  ;;  %v5401_v41 = vld [vmem:[#allocation16_spill] sm:$0xff]  ;;  %v2896_v58 = vmul.f32 -1.442695, %v5403_v38 }
 0x18b   : > { %2168 = vmatmul.mubr.f32.gmra.mrb[102].mxu1 %v4809_v53  ;;  %v4960_v7 = vpop.f32.mrb[73].mxu0  ;;  %v4962_v32 = vpop.eup %3516  ;;  %3536 = vrcp.f32 %v1546_v16  ;;  %v1548_v43 = vadd.f32 1.0, %v3515_v36  ;;  %v1909_v45 = vmul.f32 %v1813_v42, %v1081_v56  ;;  %v4964_v20 = vmul.f32 %v1860_v15, %v922_v39  ;;  %v5402_v60 = vld [vmem:[#allocation48_spill] sm:$0xff] }
 0x18c   : > { %v3519_v14 = vpop.eup %3518  ;;  %v1816_v37 = vmul.f32 %v4842_v28, %v5400_v23  ;;  %3538 = vpow2.f32 %v2916_v29  ;;  %v1904_v51 = vmul.f32 %v1808_v18, %v1071_v59  ;;  %v1863_v53 = vmul.f32 %v5402_v60, %v5401_v41  ;;  %v4971_v16 = vpop.f32.mrb[74].mxu1 }
 0x18d   : > { %v3521_v21 = vpop.eup %3520  ;;  %3540 = vrcp.f32 %v1548_v43  ;;  %v1526_v24 = vadd.f32 1.0, %v3519_v14  ;;  %2172 = vmatprep.mubr.f32.mxu1 %v1909_v45  ;;  %v1087_v42 = vpop.f32.mrb[74].mxu0  ;;  %v5404_v45 = vld [vmem:[#allocation18_spill] sm:$0xff]  ;;  %v5405_v14 = vld [vmem:[#allocation53_spill] sm:$0xff] }
 0x18e   : > { %v3523_v15 = vpop.eup %3522  ;;  %v1549_v56 = vadd.f32 1.0, %v3521_v21  ;;  %3542 = vpow2.f32 %v2918_v19  ;;  %3046 = vmatprep.mubr.f32.mxu0 %v1904_v51  ;;  %v1912_v36 = vmul.f32 %v1816_v37, %v1087_v42  ;;  %v928_v28 = vpop.f32.mrb[75].mxu1  ;;  %v1866_v23 = vmul.f32 %v5405_v14, %v5404_v45  ;;  %v5406_v21 = vld [vmem:[#allocation70_spill] sm:$0xff] }
 0x18f   : > { %2173 = vmatmul.mubr.f32.gmra.mrb[104].mxu1 %v4830_v34  ;;  %v4974_v59 = vpop.f32.mrb[75].mxu0  ;;  %v3525_v29 = vpop.eup %3524  ;;  %v1833_v18 = vmul.f32 %v3523_v15, %v5357_v6  ;;  %3544 = vrcp.f32 %v1526_v24  ;;  %v4977_v39 = vmul.f32 %v1863_v53, %v928_v28  ;;  %v1819_v19 = vmul.f32 %v4868_v57, %v4634_v11  ;;  %v5409_v14 = vld [vmem:[#allocation58_spill] sm:$0xff] }
 0x190   : > { %v3527_v43 = vpop.eup %3526  ;;  %3546 = vrcp.f32 %v1549_v56  ;;  %v1551_v37 = vadd.f32 1.0, %v3525_v29  ;;  %2177 = vmatprep.mubr.f32.mxu1 %v1912_v36  ;;  %v2919_v41 = vmul.f32 -1.442695, %v5406_v21  ;;  %v4987_v60 = vpop.f32.mrb[76].mxu1  ;;  %v1822_v28 = vmul.f32 %v4894_v61, %v4648_v8 }
 0x191   : > { %v3529_v34 = vpop.eup %3528  ;;  %v1529_v51 = vadd.f32 1.0, %v3527_v43  ;;  %3548 = vpow2.f32 %v2896_v58  ;;  %v4985_v6 = vmul.f32 %v1833_v18, %v4818_v48  ;;  %v1093_v53 = vpop.f32.mrb[76].mxu0  ;;  %v5407_v18 = vld [vmem:[#allocation71_spill] sm:$0xff]  ;;  %v2902_v8 = vmul.f32 -1.442695, %v4787_v54 }
 0x192   : > { %v3531_v24 = vpop.eup %3530  ;;  %3550 = vrcp.f32 %v1551_v37  ;;  %v1552_v42 = vadd.f32 1.0, %v3529_v34  ;;  %v1915_v15 = vmul.f32 %v1819_v19, %v1093_v53  ;;  %v934_v11 = vpop.f32.mrb[77].mxu1  ;;  %v2899_v43 = vmul.f32 -1.442695, %v5407_v18 }
 0x193   : > { %2178 = vmatmul.mubr.f32.gmra.mrb[106].mxu1 %v4846_v52  ;;  %v4990_v57 = vpop.f32.mrb[77].mxu0  ;;  %v3533_v56 = vpop.eup %3532  ;;  %v1811_v58 = vmul.f32 %v3531_v24, %v5363_v2  ;;  %3552 = vrcp.f32 %v1529_v51  ;;  %v4993_v36 = vmul.f32 %v1866_v23, %v934_v11  ;;  %v5408_v52 = vld [vmem:[#allocation21_spill] sm:$0xff]  ;;  %v1825_v11 = vmul.f32 %v4916_v31, %v4664_v25 }
 0x194   : > { %v3535_v48 = vpop.eup %3534  ;;  %3554 = vrcp.f32 %v1552_v42  ;;  %v1554_v29 = vadd.f32 1.0, %v3533_v56  ;;  %2182 = vmatprep.mubr.f32.mxu1 %v1915_v15  ;;  %v1869_v19 = vmul.f32 %v5409_v14, %v5408_v52  ;;  %v5003_v23 = vpop.f32.mrb[78].mxu1 }
 0x195   : > { %v4998_v45 = vpop.eup %3536  ;;  %v1532_v37 = vadd.f32 1.0, %v3535_v48  ;;  %3556 = vpow2.f32 %v2919_v41  ;;  %v1907_v2 = vmul.f32 %v1811_v58, %v4942_v13  ;;  %v1099_v34 = vpop.f32.mrb[78].mxu0  ;;  %v2905_v58 = vmul.f32 -1.442695, %v4798_v33 }
 0x196   : > { %v3539_v51 = vpop.eup %3538  ;;  %3558 = vrcp.f32 %v1554_v29  ;;  %v1918_v61 = vmul.f32 %v1822_v28, %v1099_v34  ;;  %v940_v53 = vpop.f32.mrb[79].mxu1  ;;  %v2908_v28 = vmul.f32 -1.442695, %v4815_v26  ;;  %v1828_v34 = vmul.f32 %v4935_v10, %v4679_v63 }
 0x197   : > { %2183 = vmatmul.mubr.f32.gmra.mrb[108].mxu1 %v4862_v62  ;;  %v5007_v24 = vpop.f32.mrb[79].mxu0  ;;  %v3541_v42 = vpop.eup %3540  ;;  %3560 = vrcp.f32 %v1532_v37  ;;  %v1555_v15 = vadd.f32 1.0, %v3539_v51  ;;  %3047 = vmatmul.mubr.f32.gmra.mrb[122].mxu0 %v1907_v2  ;;  %v5009_v41 = vmul.f32 %v1869_v19, %v940_v53  ;;  %v2914_v37 = vmul.f32 -1.442695, %v4848_v50 }
 0x198   : > { %v3543_v13 = vpop.eup %3542  ;;  %v1836_v56 = vmul.f32 %v3541_v42, %v5372_v47  ;;  %3562 = vpow2.f32 %v2899_v43  ;;  %2187 = vmatprep.mubr.f32.mxu1 %v1918_v61  ;;  %v1105_v29 = vpop.f32.mrb[80].mxu0  ;;  %v2911_v43 = vmul.f32 -1.442695, %v4832_v40 }
 0x199   : > { %v3545_v62 = vpop.eup %3544  ;;  %3564 = vrcp.f32 %v1555_v15  ;;  %v1557_v48 = vadd.f32 1.0, %v3543_v13  ;;  %v1921_v25 = vmul.f32 %v1825_v11, %v1105_v29  ;;  %v5023_v47 = vpop.f32.mrb[81].mxu0 }
 0x19a   : > { %v5016_v52 = vpop.eup %3546  ;;  %v1814_v14 = vmul.f32 %v3545_v62, %v5377_v35  ;;  %3566 = vpow2.f32 %v2902_v8  ;;  %v5020_v19 = vmul.f32 %v1836_v56, %v4835_v12  ;;  %v2917_v8 = vmul.f32 -1.442695, %v4858_v5  ;;  %v5412_v56 = vld [vmem:[#allocation37_spill] sm:$0xff] }
 0x19b   : > { %2188 = vmatmul.mubr.f32.gmra.mrb[110].mxu1 %v4888_v30  ;;  %v3549_v31 = vpop.eup %3548  ;;  %3568 = vrcp.f32 %v1557_v48  ;;  %v5413_v48 = vld [vmem:[#allocation46_spill] sm:$0xff] }
 0x19c   : > { %v3551_v2 = vpop.eup %3550  ;;  %v1535_v35 = vadd.f32 1.0, %v3549_v31  ;;  %3570 = vpow2.f32 %v2905_v58  ;;  %v1910_v12 = vmul.f32 %v1814_v14, %v4960_v7  ;;  %2192 = vmatprep.mubr.f32.mxu1 %v1921_v25  ;;  %v1111_v61 = vpop.f32.mrb[82].mxu0  ;;  %v5410_v7 = vld [vmem:[#allocation45_spill] sm:$0xff]  ;;  %v2923_v58 = vmul.f32 -1.442695, %v5412_v56 }
 0x19d   : > { %v3553_v51 = vpop.eup %3552  ;;  %v1839_v30 = vmul.f32 %v3551_v2, %v5384_v9  ;;  %3572 = vpow2.f32 %v2908_v28  ;;  %v1924_v15 = vmul.f32 %v1828_v34, %v1111_v61  ;;  %v5036_v63 = vpop.f32.mrb[83].mxu0  ;;  %v5411_v9 = vld [vmem:[#allocation19_spill] sm:$0xff]  ;;  %v5414_v2 = vld [vmem:[#allocation22_spill] sm:$0xff] }
 0x19e   : > { %v5032_v53 = vpop.eup %3554  ;;  %v1817_v42 = vmul.f32 %v3553_v51, %v5386_v22  ;;  %3574 = vrcp.f32 %v1535_v35  ;;  %3049 = vmatprep.mubr.f32.mxu0 %v1910_v12  ;;  %v2920_v11 = vmul.f32 -1.442695, %v5411_v9  ;;  %v1831_v22 = vmul.f32 %v4962_v32, %v5413_v48  ;;  %v5415_v12 = vld [vmem:[#allocation34_spill] sm:$0xff] }
 0x19f   : > { %2193 = vmatmul.mubr.f32.gmra.mrb[112].mxu1 %v4920_v3  ;;  %v3557_v10 = vpop.eup %3556  ;;  %3576 = vpow2.f32 %v2911_v43  ;;  %v5039_v13 = vmul.f32 %v1839_v30, %v5410_v7  ;;  %v2926_v34 = vmul.f32 -1.442695, %v5414_v2  ;;  %v5416_v30 = vld [vmem:[#allocation51_spill] sm:$0xff] }
 0x1a0   : > { %v3559_v62 = vpop.eup %3558  ;;  %v1558_v28 = vadd.f32 1.0, %v3557_v10  ;;  %3578 = vpow2.f32 %v2914_v37  ;;  %v1913_v29 = vmul.f32 %v1817_v42, %v4974_v59  ;;  %2197 = vmatprep.mubr.f32.mxu1 %v1924_v15  ;;  %v1117_v25 = vpop.f32.mrb[84].mxu0 }
 0x1a1   : > { %v3561_v3 = vpop.eup %3560  ;;  %v1842_v14 = vmul.f32 %v3559_v62, %v5393_v46  ;;  %3580 = vpow2.f32 %v2917_v8  ;;  %v1927_v35 = vmul.f32 %v1831_v22, %v1117_v25  ;;  %v5050_v32 = vpop.f32.mrb[85].mxu0  ;;  %v5417_v8 = vld [vmem:[#allocation40_spill] sm:$0xff] }
 0x1a2   : > { %v3563_v31 = vpop.eup %3562  ;;  %v1820_v43 = vmul.f32 %v3561_v3, %v5394_v17  ;;  %3582 = vrcp.f32 %v1558_v28  ;;  %3050 = vmatmul.mubr.f32.gmra.mrb[124].mxu0 %v1913_v29  ;;  %v1834_v17 = vmul.f32 %v4998_v45, %v5416_v30  ;;  %v2929_v61 = vmul.f32 -1.442695, %v5417_v8  ;;  %v5418_v28 = vld [vmem:[#allocation56_spill] sm:$0xff] }
 0x1a3   : > { %2198 = vmatmul.mubr.f32.gmra.mrb[114].mxu1 %v4939_v49  ;;  %v5052_v37 = vpop.eup %3564  ;;  %v1538_v59 = vadd.f32 1.0, %v3563_v31  ;;  %v5055_v51 = vmul.f32 %v1842_v14, %v5415_v12  ;;  %3584 = vpow2.f32 %v2920_v11  ;;  %v1837_v29 = vmul.f32 %v5016_v52, %v5418_v28  ;;  %v5419_v14 = vld [vmem:[#allocation44_spill] sm:$0xff] }
 0x1a4   : > { %v3567_v46 = vpop.eup %3566  ;;  %3586 = vpow2.f32 %v2923_v58  ;;  %v1916_v42 = vmul.f32 %v1820_v43, %v4990_v57  ;;  %2202 = vmatprep.mubr.f32.mxu1 %v1927_v35  ;;  %v1123_v10 = vpop.f32.mrb[86].mxu0  ;;  %v2932_v57 = vmul.f32 -1.442695, %v4933_v4 }
 0x1a5   : > { %v3569_v49 = vpop.eup %3568  ;;  %3588 = vrcp.f32 %v1538_v59  ;;  %v1541_v15 = vadd.f32 1.0, %v3567_v46  ;;  %v1930_v11 = vmul.f32 %v1834_v17, %v1123_v10  ;;  %v5063_v48 = vpop.f32.mrb[87].mxu0  ;;  %v2935_v46 = vmul.f32 -1.442695, %v4952_v44 }
 0x1a6   : > { %v3571_v7 = vpop.eup %3570  ;;  %v1845_v62 = vmul.f32 %v3569_v49, %v5399_v55  ;;  %3590 = vpow2.f32 %v2926_v34  ;;  %3052 = vmatprep.mubr.f32.mxu0 %v1916_v42 }
 0x1a7   : > { %2203 = vmatmul.mubr.f32.gmra.mrb[116].mxu1 %v4957_v27  ;;  %v3573_v45 = vpop.eup %3572  ;;  %3592 = vrcp.f32 %v1541_v15  ;;  %v1544_v58 = vadd.f32 1.0, %v3571_v7  ;;  %v2938_v7 = vmul.f32 -1.442695, %v4971_v16 }
 0x1a8   : > { %v3575_v22 = vpop.eup %3574  ;;  %v1547_v3 = vadd.f32 1.0, %v3573_v45  ;;  %v5069_v25 = vmul.f32 %v1845_v62, %v5419_v14  ;;  %3594 = vpow2.f32 %v2929_v61  ;;  %2207 = vmatprep.mubr.f32.mxu1 %v1930_v11  ;;  %v1129_v31 = vpop.f32.mrb[88].mxu0  ;;  %v5420_v61 = vld [vmem:[#allocation61_spill] sm:$0xff] }
 0x1a9   : > { %v3577_v55 = vpop.eup %3576  ;;  %v1823_v27 = vmul.f32 %v3575_v22, %v5403_v38  ;;  %3596 = vrcp.f32 %v1544_v58  ;;  %v1933_v35 = vmul.f32 %v1837_v29, %v1129_v31  ;;  %v5073_v59 = vpop.f32.mrb[89].mxu0  ;;  %v1840_v38 = vmul.f32 %v5032_v53, %v5420_v61  ;;  %v5421_v29 = vld [vmem:[#allocation23_spill] sm:$0xff] }
 0x1aa   : > { %v3579_v43 = vpop.eup %3578  ;;  %3598 = vrcp.f32 %v1547_v3  ;;  %v1550_v34 = vadd.f32 1.0, %v3577_v55  ;;  %v1843_v58 = vmul.f32 %v5052_v37, %v5395_v1  ;;  %v2941_v22 = vmul.f32 -1.442695, %v4987_v60 }
 0x1ab   : > { %2208 = vmatmul.mubr.f32.gmra.mrb[118].mxu1 %v4985_v6  ;;  %v3581_v52 = vpop.eup %3580  ;;  %v1553_v12 = vadd.f32 1.0, %v3579_v43  ;;  %3600 = vpow2.f32 %v2932_v57  ;;  %v1919_v30 = vmul.f32 %v1823_v27, %v5007_v24  ;;  %v2943_v3 = vmul.f32 -1.442695, %v5421_v29 }
 0x1ac   : > { %v3583_v17 = vpop.eup %3582  ;;  %3602 = vrcp.f32 %v1550_v34  ;;  %v1556_v42 = vadd.f32 1.0, %v3581_v52  ;;  %2212 = vmatprep.mubr.f32.mxu1 %v1933_v35  ;;  %v1135_v6 = vpop.f32.mrb[90].mxu0  ;;  %v2944_v34 = vmul.f32 -1.442695, %v5003_v23 }
 0x1ad   : > { %v3585_v49 = vpop.eup %3584  ;;  %3604 = vrcp.f32 %v1553_v12  ;;  %3053 = vmatmul.mubr.f32.gmra.mrb[126].mxu0 %v1919_v30  ;;  %v1936_v62 = vmul.f32 %v1840_v38, %v1135_v6  ;;  %v5081_v24 = vpop.f32.mrb[91].mxu0  ;;  %v1846_v52 = vmul.f32 %v3583_v17, %v5406_v21  ;;  %v5422_v17 = vld [vmem:[#allocation38_spill] sm:$0xff] }
 0x1ae   : > { %v3587_v15 = vpop.eup %3586  ;;  %3606 = vrcp.f32 %v1556_v42  ;;  %v1559_v10 = vadd.f32 1.0, %v3585_v49  ;;  %v1573_v49 = vadd.f32 1.0, %v5422_v17  ;;  %v5432_v17 = vld [vmem:[#allocation57_spill] sm:$0xff] }
 0x1af   : > { %2213 = vmatmul.mubr.f32.gmra.mrb[120].mxu1 %v5020_v19  ;;  %v3589_v11 = vpop.eup %3588  ;;  %v1562_v45 = vadd.f32 1.0, %v3587_v15  ;;  %3608 = vpow2.f32 %v2935_v46  ;;  %v5423_v15 = vld [vmem:[#allocation7_spill] sm:$0xff] }
 0x1b0   : > { %v3591_v53 = vpop.eup %3590  ;;  %v1826_v57 = vmul.f32 %v3589_v11, %v5407_v18  ;;  %3610 = vrcp.f32 %v1559_v10  ;;  %2217 = vmatprep.mubr.f32.mxu1 %v1936_v62  ;;  %v1141_v14 = vpop.f32.mrb[92].mxu0  ;;  %v5424_v10 = vld [vmem:[#allocation26_spill] sm:$0xff] }
 0x1b1   : > { %v3593_v28 = vpop.eup %3592  ;;  %3612 = vrcp.f32 %v1562_v45  ;;  %v1565_v19 = vadd.f32 1.0, %v3591_v53  ;;  %v1939_v43 = vmul.f32 %v1843_v58, %v1141_v14  ;;  %v1143_v1 = vpop.f32.mrb[93].mxu0  ;;  %v5427_v14 = vld [vmem:[#allocation30_spill] sm:$0xff] }
 0x1b2   : > { %v3595_v55 = vpop.eup %3594  ;;  %v1829_v27 = vmul.f32 %v3593_v28, %v4787_v54  ;;  %3614 = vpow2.f32 %v2938_v7  ;;  %v1922_v31 = vmul.f32 %v1826_v57, %v5023_v47  ;;  %v1849_v7 = vmul.f32 %v5424_v10, %v5423_v15  ;;  %v5434_v15 = vld [vmem:[#allocation42_spill] sm:$0xff] }
 0x1b3   : > { %2218 = vmatmul.mubr.f32.gmra.mrb[122].mxu1 %v5039_v13  ;;  %v3597_v18 = vpop.eup %3596  ;;  %3616 = vrcp.f32 %v1565_v19  ;;  %v1568_v37 = vadd.f32 1.0, %v3595_v55 }
 0x1b4   : > { %v3599_v35 = vpop.eup %3598  ;;  %v1832_v12 = vmul.f32 %v3597_v18, %v4798_v33  ;;  %3618 = vpow2.f32 %v2941_v22  ;;  %3055 = vmatprep.mubr.f32.mxu0 %v1922_v31  ;;  %v1925_v54 = vmul.f32 %v1829_v27, %v5036_v63  ;;  %2222 = vmatprep.mubr.f32.mxu1 %v1939_v43  ;;  %v1147_v13 = vpop.f32.mrb[94].mxu0 }
 0x1b5   : > { %v3601_v47 = vpop.eup %3600  ;;  %v1835_v46 = vmul.f32 %v3599_v35, %v4815_v26  ;;  %3620 = vrcp.f32 %v1568_v37  ;;  %v1942_v42 = vmul.f32 %v1846_v52, %v1147_v13  ;;  %v1149_v33 = vpop.f32.mrb[95].mxu0  ;;  %v5428_v35 = vld [vmem:[#allocation49_spill] sm:$0xff] }
 0x1b6   : > { %v3603_v30 = vpop.eup %3602  ;;  %3622 = vpow2.f32 %v2943_v3  ;;  %v1571_v61 = vadd.f32 1.0, %v3601_v47  ;;  %3056 = vmatmul.mubr.f32.gmra.mrb[128].mxu0 %v1925_v54  ;;  %v1928_v38 = vmul.f32 %v1832_v12, %v5050_v32  ;;  %v5429_v12 = vld [vmem:[#allocation52_spill] sm:$0xff]  ;;  %v5430_v47 = vld [vmem:[#allocation11_spill] sm:$0xff] }
 0x1b7   : > { %2223 = vmatmul.mubr.f32.gmra.mrb[124].mxu1 %v5055_v51  ;;  %v3605_v21 = vpop.eup %3604  ;;  %v1838_v63 = vmul.f32 %v3603_v30, %v4832_v40  ;;  %3624 = vpow2.f32 %v2944_v34  ;;  %v1931_v26 = vmul.f32 %v1835_v46, %v5063_v48  ;;  %v1579_v54 = vadd.f32 1.0, %v5429_v12  ;;  %v5431_v46 = vld [vmem:[#allocation36_spill] sm:$0xff] }
 0x1b8   : > { %v3607_v6 = vpop.eup %3606  ;;  %v1841_v62 = vmul.f32 %v3605_v21, %v4848_v50  ;;  %3626 = vrcp.f32 %v1571_v61  ;;  %3058 = vmatprep.mubr.f32.mxu0 %v1928_v38  ;;  %2227 = vmatprep.mubr.f32.mxu1 %v1942_v42  ;;  %v1153_v45 = vpop.f32.mrb[96].mxu0  ;;  %v5425_v50 = vld [vmem:[#allocation39_spill] sm:$0xff]  ;;  %v1855_v13 = vmul.f32 %v5431_v46, %v5430_v47 }
 0x1b9   : > { %v3609_v32 = vpop.eup %3608  ;;  %v1844_v51 = vmul.f32 %v3607_v6, %v4858_v5  ;;  %v1934_v11 = vmul.f32 %v1838_v63, %v5073_v59  ;;  %v1945_v58 = vmul.f32 %v1849_v7, %v1153_v45  ;;  %v1155_v57 = vpop.f32.mrb[97].mxu0  ;;  %3628 = vrcp.f32 %v1573_v49  ;;  %v5426_v59 = vld [vmem:[#allocation9_spill] sm:$0xff]  ;;  %v5435_v45 = vld [vmem:[#allocation50_spill] sm:$0xff] }
 0x1ba   : > { %v3611_v53 = vpop.eup %3610  ;;  %v1574_v40 = vadd.f32 1.0, %v3609_v32  ;;  %3059 = vmatmul.mubr.f32.gmra.mrb[130].mxu0 %v1931_v26  ;;  %v1937_v48 = vmul.f32 %v1841_v62, %v5081_v24  ;;  %v1576_v28 = vadd.f32 1.0, %v5425_v50  ;;  %v1852_v55 = vmul.f32 %v5427_v14, %v5426_v59  ;;  %v5433_v6 = vld [vmem:[#allocation13_spill] sm:$0xff] }
 0x1bb   : > { %2228 = vmatmul.mubr.f32.gmra.mrb[126].mxu1 %v5069_v25  ;;  %v3613_v22 = vpop.eup %3612  ;;  %v1847_v3 = vmul.f32 %v3611_v53, %v5411_v9  ;;  %3061 = vmatprep.mubr.f32.mxu0 %v1934_v11  ;;  %v1940_v5 = vmul.f32 %v1844_v51, %v1143_v1  ;;  %v1858_v10 = vmul.f32 %v5434_v15, %v5433_v6 }
 0x1bc   : > { %v3615_v19 = vpop.eup %3614  ;;  %v1850_v27 = vmul.f32 %v3613_v22, %v5412_v56  ;;  %3630 = vrcp.f32 %v1574_v40  ;;  %2232 = vmatprep.mubr.f32.mxu1 %v1945_v58  ;;  %v1159_v43 = vpop.f32.mrb[98].mxu0 }
 0x1bd   : > { %v3617_v24 = vpop.eup %3616  ;;  %v1577_v31 = vadd.f32 1.0, %v3615_v19  ;;  %v1943_v25 = vmul.f32 %v1847_v3, %v1149_v33  ;;  %v1948_v9 = vmul.f32 %v1852_v55, %v1159_v43  ;;  %v1161_v1 = vpop.f32.mrb[99].mxu0  ;;  %3632 = vrcp.f32 %v1576_v28  ;;  %v5437_v19 = vld [vmem:[#allocation17_spill] sm:$0xff]  ;;  %v5438_v43 = vld [vmem:[#allocation20_spill] sm:$0xff] }
 0x1be   : > { %v3619_v18 = vpop.eup %3618  ;;  %v1853_v37 = vmul.f32 %v3617_v24, %v5414_v2  ;;  %3062 = vmatmul.mubr.f32.gmra.mrb[132].mxu0 %v1937_v48  ;;  %v1946_v34 = vmul.f32 %v1850_v27, %v1155_v57  ;;  %v5436_v48 = vld [vmem:[#allocation15_spill] sm:$0xff] }
 0x1bf   : > { %2233 = vmatmul.mubr.f32.gmra.mrb[128].mxu1 %v5428_v35  ;;  %v3621_v52 = vpop.eup %3620  ;;  %3064 = vmatprep.mubr.f32.mxu0 %v1940_v5  ;;  %3634 = vrcp.f32 %v1577_v31  ;;  %v1580_v30 = vadd.f32 1.0, %v3619_v18 }
 0x1c0   : > { %v3623_v56 = vpop.eup %3622  ;;  %v1949_v61 = vmul.f32 %v1853_v37, %v1161_v1  ;;  %2237 = vmatprep.mubr.f32.mxu1 %v1948_v9  ;;  %v1856_v38 = vmul.f32 %v3621_v52, %v5417_v8  ;;  %v1165_v42 = vpop.f32.mrb[100].mxu0  ;;  %3636 = vrcp.f32 %v1579_v54 }
 0x1c1   : > { %v3625_v2 = vpop.eup %3624  ;;  %v1951_v21 = vmul.f32 %v1855_v13, %v1165_v42  ;;  %v1167_v49 = vpop.f32.mrb[101].mxu0  ;;  %v1582_v63 = vadd.f32 1.0, %v3623_v56  ;;  %3638 = vrcp.f32 %v1580_v30 }
 0x1c2   : > { %v3627_v33 = vpop.eup %3626  ;;  %3065 = vmatmul.mubr.f32.gmra.mrb[134].mxu0 %v1943_v25  ;;  %v1952_v26 = vmul.f32 %v1856_v38, %v1167_v49  ;;  %v1583_v7 = vadd.f32 1.0, %v3625_v2 }
 0x1c3   : > { %2238 = vmatmul.mubr.f32.gmra.mrb[130].mxu1 %v5432_v17  ;;  %3067 = vmatprep.mubr.f32.mxu0 %v1946_v34  ;;  %v3629_v62 = vpop.eup %3628  ;;  %v1859_v8 = vmul.f32 %v3627_v33, %v4933_v4  ;;  %3640 = vrcp.f32 %v1582_v63 }
 0x1c4   : > { %2242 = vmatprep.mubr.f32.mxu1 %v1951_v21  ;;  %v1171_v32 = vpop.f32.mrb[102].mxu0  ;;  %v1861_v58 = vmul.f32 %v3629_v62, %v5436_v48  ;;  %3642 = vrcp.f32 %v1583_v7 }
 0x1c5   : > { %v1954_v11 = vmul.f32 %v1858_v10, %v1171_v32  ;;  %v1173_v53 = vpop.f32.mrb[103].mxu0 }
 0x1c6   : > { %v3631_v51 = vpop.eup %3630  ;;  %3068 = vmatmul.mubr.f32.gmra.mrb[136].mxu0 %v1949_v61  ;;  %v1955_v40 = vmul.f32 %v1859_v8, %v1173_v53 }
 0x1c7   : > { %2243 = vmatmul.mubr.f32.gmra.mrb[132].mxu1 %v5435_v45  ;;  %3070 = vmatprep.mubr.f32.mxu0 %v1952_v26  ;;  %v3633_v57 = vpop.eup %3632  ;;  %v1862_v22 = vmul.f32 %v3631_v51, %v4952_v44 }
 0x1c8   : > { %2247 = vmatprep.mubr.f32.mxu1 %v1954_v11  ;;  %v1177_v50 = vpop.f32.mrb[104].mxu0  ;;  %v1864_v59 = vmul.f32 %v3633_v57, %v5437_v19 }
 0x1c9   : > { %v3635_v28 = vpop.eup %3634  ;;  %v1957_v4 = vmul.f32 %v1861_v58, %v1177_v50  ;;  %v1179_v3 = vpop.f32.mrb[105].mxu0 }
 0x1ca   : > { %3071 = vmatmul.mubr.f32.gmra.mrb[138].mxu0 %v1955_v40  ;;  %v1958_v5 = vmul.f32 %v1862_v22, %v1179_v3  ;;  %v3637_v14 = vpop.eup %3636  ;;  %v1865_v55 = vmul.f32 %v3635_v28, %v4971_v16 }
 0x1cb   : > { %2248 = vmatmul.mubr.f32.gmra.mrb[134].mxu1 %v4946_v0  ;;  %v3639_v24 = vpop.eup %3638  ;;  %v1867_v18 = vmul.f32 %v3637_v14, %v5438_v43 }
 0x1cc   : > { %2252 = vmatprep.mubr.f32.mxu1 %v1957_v4  ;;  %v1183_v27 = vpop.f32.mrb[106].mxu0  ;;  %3073 = vmatprep.mubr.f32.mxu0 %v1958_v5  ;;  %v1868_v37 = vmul.f32 %v3639_v24, %v4987_v60 }
 0x1cd   : > { %v1960_v31 = vmul.f32 %v1864_v59, %v1183_v27  ;;  %v1185_v44 = vpop.f32.mrb[107].mxu0  ;;  %v3641_v0 = vpop.eup %3640 }
 0x1ce   : > { %v1961_v25 = vmul.f32 %v1865_v55, %v1185_v44  ;;  %v3643_v9 = vpop.eup %3642 }
 0x1cf   : > { %2253 = vmatmul.mubr.f32.gmra.mrb[136].mxu1 %v4964_v20  ;;  %v1870_v20 = vmul.f32 %v3641_v0, %v5421_v29  ;;  %v1871_v52 = vmul.f32 %v3643_v9, %v5003_v23 }
 0x1d0   : > { %2257 = vmatprep.mubr.f32.mxu1 %v1960_v31  ;;  %v1189_v34 = vpop.f32.mrb[108].mxu0  ;;  %3074 = vmatmul.mubr.f32.gmra.mrb[140].mxu0 %v1961_v25 }
 0x1d1   : > { %v1963_v35 = vmul.f32 %v1867_v18, %v1189_v34  ;;  %v1191_v16 = vpop.f32.mrb[109].mxu0 }
 0x1d2   : > { %v1964_v1 = vmul.f32 %v1868_v37, %v1191_v16 }
 0x1d3   : > { %2258 = vmatmul.mubr.f32.gmra.mrb[138].mxu1 %v4977_v39 }
 0x1d4   : > { %2262 = vmatprep.mubr.f32.mxu1 %v1963_v35  ;;  %v1195_v12 = vpop.f32.mrb[110].mxu0  ;;  %3076 = vmatprep.mubr.f32.mxu0 %v1964_v1 }
 0x1d5   : > { %v1966_v54 = vmul.f32 %v1870_v20, %v1195_v12  ;;  %v1197_v60 = vpop.f32.mrb[111].mxu0 }
 0x1d6   : > { %v1967_v56 = vmul.f32 %v1871_v52, %v1197_v60 }
 0x1d7   : > { %2263 = vmatmul.mubr.f32.gmra.mrb[140].mxu1 %v4993_v36 }
 0x1d8   : > { %2267 = vmatprep.mubr.f32.mxu1 %v1966_v54  ;;  %3077 = vmatmul.mubr.f32.gmra.mrb[142].mxu0 %v1967_v56 }
 0x1db   : > { %2268 = vmatmul.mubr.f32.gmra.mrb[142].mxu1 %v5009_v41 }
 0x230   : > { %v2114_v39 = vpop.f32.mrb[80].mxu1 }
 0x231   : > { %v2116_v47 = vpop.f32.mrb[81].mxu1 }
 0x234   : > { %v2119_v46 = vpop.f32.mrb[82].mxu1 }
 0x235   : > { %v3033_v29 = vpop.f32.mrb[112].mxu0  ;;  %v2121_v30 = vpop.f32.mrb[83].mxu1 }
 0x236   : > { %v2339_v13 = vpop.f32.mrb[113].mxu0  ;;  %v2345_v23 = vadd.f32 %v3033_v29, %v2119_v46 }
 0x237   : > { %v2340_v61 = vadd.f32 %v2339_v13, %v2114_v39 }
 0x238   : > { %2598 = vst [vmem:[%s5140_s8 + $0x8] sm:$0xff] %v2345_v23  ;;  %v2124_v36 = vpop.f32.mrb[84].mxu1 }
 0x239   : > { %2597 = vst [vmem:[%s5140_s8] sm:$0xff] %v2340_v61  ;;  %v2126_v41 = vpop.f32.mrb[85].mxu1 }
 0x23c   : > { %v2129_v38 = vpop.f32.mrb[86].mxu1 }
 0x23d   : > { %v3036_v2 = vpop.f32.mrb[114].mxu0  ;;  %v2131_v21 = vpop.f32.mrb[87].mxu1 }
 0x23e   : > { %v2349_v42 = vpop.f32.mrb[115].mxu0  ;;  %v2355_v33 = vadd.f32 %v3036_v2, %v2129_v38 }
 0x23f   : > { %v2350_v17 = vadd.f32 %v2349_v42, %v2124_v36 }
 0x240   : > { %2600 = vst [vmem:[%s5140_s8 + $0x18] sm:$0xff] %v2355_v33  ;;  %v2134_v49 = vpop.f32.mrb[88].mxu1 }
 0x241   : > { %2599 = vst [vmem:[%s5140_s8 + $0x10] sm:$0xff] %v2350_v17  ;;  %v2136_v63 = vpop.f32.mrb[89].mxu1 }
 0x244   : > { %v2139_v6 = vpop.f32.mrb[90].mxu1 }
 0x245   : > { %v3039_v26 = vpop.f32.mrb[116].mxu0  ;;  %v2141_v7 = vpop.f32.mrb[91].mxu1 }
 0x246   : > { %v2359_v15 = vpop.f32.mrb[117].mxu0  ;;  %v2365_v10 = vadd.f32 %v3039_v26, %v2139_v6 }
 0x247   : > { %v2360_v62 = vadd.f32 %v2359_v15, %v2134_v49 }
 0x248   : > { %2602 = vst [vmem:[%s5140_s8 + $0x28] sm:$0xff] %v2365_v10  ;;  %v2144_v8 = vpop.f32.mrb[92].mxu1 }
 0x249   : > { %2601 = vst [vmem:[%s5140_s8 + $0x20] sm:$0xff] %v2360_v62  ;;  %v2146_v32 = vpop.f32.mrb[93].mxu1 }
 0x24c   : > { %v2149_v51 = vpop.f32.mrb[94].mxu1 }
 0x24d   : > { %v2151_v11 = vpop.f32.mrb[95].mxu1 }
 0x252   : > { %v2154_v45 = vpop.f32.mrb[96].mxu1 }
 0x253   : > { %v2156_v53 = vpop.f32.mrb[97].mxu1  ;;  %v3042_v40 = vpop.f32.mrb[118].mxu0 }
 0x254   : > { %v2375_v48 = vadd.f32 %v3042_v40, %v2149_v51  ;;  %v2369_v58 = vpop.f32.mrb[119].mxu0 }
 0x255   : > { %v2370_v57 = vadd.f32 %v2369_v58, %v2144_v8 }
 0x256   : > { %v2159_v22 = vpop.f32.mrb[98].mxu1  ;;  %2604 = vst [vmem:[%s5140_s8 + $0x38] sm:$0xff] %v2375_v48 }
 0x257   : > { %v2161_v50 = vpop.f32.mrb[99].mxu1  ;;  %2603 = vst [vmem:[%s5140_s8 + $0x30] sm:$0xff] %v2370_v57 }
 0x25a   : > { %v2164_v28 = vpop.f32.mrb[100].mxu1 }
 0x25b   : > { %v2166_v4 = vpop.f32.mrb[101].mxu1 }
 0x25c   : > { %v3045_v3 = vpop.f32.mrb[120].mxu0 }
 0x25d   : > { %v2385_v5 = vadd.f32 %v3045_v3, %v2159_v22  ;;  %v2379_v19 = vpop.f32.mrb[121].mxu0 }
 0x25e   : > { %v2169_v59 = vpop.f32.mrb[102].mxu1  ;;  %v2380_v14 = vadd.f32 %v2379_v19, %v2154_v45 }
 0x25f   : > { %v2171_v55 = vpop.f32.mrb[103].mxu1  ;;  %2606 = vst [vmem:[%s5140_s8 + $0x48] sm:$0xff] %v2385_v5 }
 0x260   : > { %2605 = vst [vmem:[%s5140_s8 + $0x40] sm:$0xff] %v2380_v14 }
 0x262   : > { %v2174_v27 = vpop.f32.mrb[104].mxu1 }
 0x263   : > { %v2176_v24 = vpop.f32.mrb[105].mxu1 }
 0x266   : > { %v2179_v31 = vpop.f32.mrb[106].mxu1 }
 0x267   : > { %v2181_v44 = vpop.f32.mrb[107].mxu1 }
 0x26a   : > { %v2184_v25 = vpop.f32.mrb[108].mxu1  ;;  %v3048_v43 = vpop.f32.mrb[122].mxu0 }
 0x26b   : > { %v2186_v18 = vpop.f32.mrb[109].mxu1  ;;  %v2395_v0 = vadd.f32 %v3048_v43, %v2169_v59  ;;  %v2389_v37 = vpop.f32.mrb[123].mxu0 }
 0x26c   : > { %v2390_v34 = vadd.f32 %v2389_v37, %v2164_v28 }
 0x26d   : > { %2608 = vst [vmem:[%s5140_s8 + $0x58] sm:$0xff] %v2395_v0 }
 0x26e   : > { %v2189_v9 = vpop.f32.mrb[110].mxu1  ;;  %2607 = vst [vmem:[%s5140_s8 + $0x50] sm:$0xff] %v2390_v34 }
 0x26f   : > { %v2191_v35 = vpop.f32.mrb[111].mxu1 }
 0x272   : > { %v2194_v16 = vpop.f32.mrb[112].mxu1 }
 0x273   : > { %v2196_v1 = vpop.f32.mrb[113].mxu1 }
 0x275   : > { %v3051_v20 = vpop.f32.mrb[124].mxu0 }
 0x276   : > { %v2199_v52 = vpop.f32.mrb[114].mxu1  ;;  %v2405_v12 = vadd.f32 %v3051_v20, %v2179_v31  ;;  %v2399_v54 = vpop.f32.mrb[125].mxu0 }
 0x277   : > { %v2201_v60 = vpop.f32.mrb[115].mxu1  ;;  %v2400_v56 = vadd.f32 %v2399_v54, %v2174_v27 }
 0x278   : > { %2610 = vst [vmem:[%s5140_s8 + $0x68] sm:$0xff] %v2405_v12 }
 0x279   : > { %2609 = vst [vmem:[%s5140_s8 + $0x60] sm:$0xff] %v2400_v56 }
 0x27a   : > { %v2204_v39 = vpop.f32.mrb[116].mxu1 }
 0x27b   : > { %v2206_v47 = vpop.f32.mrb[117].mxu1 }
 0x27e   : > { %v2209_v29 = vpop.f32.mrb[118].mxu1 }
 0x27f   : > { %v2211_v46 = vpop.f32.mrb[119].mxu1 }
 0x280   : > { %v3054_v13 = vpop.f32.mrb[126].mxu0 }
 0x281   : > { %v2415_v23 = vadd.f32 %v3054_v13, %v2189_v9  ;;  %v2409_v30 = vpop.f32.mrb[127].mxu0 }
 0x282   : > { %v2214_v61 = vpop.f32.mrb[120].mxu1  ;;  %v2410_v36 = vadd.f32 %v2409_v30, %v2184_v25 }
 0x283   : > { %v2216_v41 = vpop.f32.mrb[121].mxu1  ;;  %2612 = vst [vmem:[%s5140_s8 + $0x78] sm:$0xff] %v2415_v23 }
 0x284   : > { %2611 = vst [vmem:[%s5140_s8 + $0x70] sm:$0xff] %v2410_v36 }
 0x286   : > { %v2219_v2 = vpop.f32.mrb[122].mxu1 }
 0x287   : > { %v2221_v38 = vpop.f32.mrb[123].mxu1 }
 0x289   : > { %v3057_v42 = vpop.f32.mrb[128].mxu0 }
 0x28a   : > { %v2224_v33 = vpop.f32.mrb[124].mxu1  ;;  %v2425_v21 = vadd.f32 %v3057_v42, %v2199_v52  ;;  %v2419_v17 = vpop.f32.mrb[129].mxu0 }
 0x28b   : > { %v2226_v49 = vpop.f32.mrb[125].mxu1  ;;  %v2420_v63 = vadd.f32 %v2419_v17, %v2194_v16 }
 0x28c   : > { %2614 = vst [vmem:[%s5140_s8 + $0x88] sm:$0xff] %v2425_v21 }
 0x28d   : > { %2613 = vst [vmem:[%s5140_s8 + $0x80] sm:$0xff] %v2420_v63  ;;  %v3060_v26 = vpop.f32.mrb[130].mxu0 }
 0x28e   : > { %v2229_v6 = vpop.f32.mrb[126].mxu1  ;;  %v2435_v15 = vadd.f32 %v3060_v26, %v2209_v29  ;;  %v2429_v10 = vpop.f32.mrb[131].mxu0 }
 0x28f   : > { %v2231_v7 = vpop.f32.mrb[127].mxu1  ;;  %v2430_v62 = vadd.f32 %v2429_v10, %v2204_v39 }
 0x290   : > { %2616 = vst [vmem:[%s5140_s8 + $0x98] sm:$0xff] %v2435_v15 }
 0x291   : > { %2615 = vst [vmem:[%s5140_s8 + $0x90] sm:$0xff] %v2430_v62  ;;  %v3063_v8 = vpop.f32.mrb[132].mxu0 }
 0x292   : > { %v2234_v32 = vpop.f32.mrb[128].mxu1  ;;  %v2445_v51 = vadd.f32 %v3063_v8, %v2219_v2  ;;  %v2439_v11 = vpop.f32.mrb[133].mxu0 }
 0x293   : > { %v2236_v45 = vpop.f32.mrb[129].mxu1  ;;  %v2440_v53 = vadd.f32 %v2439_v11, %v2214_v61 }
 0x294   : > { %2618 = vst [vmem:[%s5140_s8 + $0xa8] sm:$0xff] %v2445_v51 }
 0x295   : > { %2617 = vst [vmem:[%s5140_s8 + $0xa0] sm:$0xff] %v2440_v53  ;;  %v3066_v40 = vpop.f32.mrb[134].mxu0 }
 0x296   : > { %v2239_v48 = vpop.f32.mrb[130].mxu1  ;;  %v2455_v58 = vadd.f32 %v3066_v40, %v2229_v6  ;;  %v2449_v57 = vpop.f32.mrb[135].mxu0 }
 0x297   : > { %v2241_v22 = vpop.f32.mrb[131].mxu1  ;;  %v2450_v50 = vadd.f32 %v2449_v57, %v2224_v33 }
 0x298   : > { %2620 = vst [vmem:[%s5140_s8 + $0xb8] sm:$0xff] %v2455_v58 }
 0x299   : > { %2619 = vst [vmem:[%s5140_s8 + $0xb0] sm:$0xff] %v2450_v50  ;;  %v3069_v28 = vpop.f32.mrb[136].mxu0 }
 0x29a   : > { %v2244_v4 = vpop.f32.mrb[132].mxu1  ;;  %v2465_v3 = vadd.f32 %v3069_v28, %v2239_v48  ;;  %v2459_v5 = vpop.f32.mrb[137].mxu0 }
 0x29b   : > { %v2246_v19 = vpop.f32.mrb[133].mxu1  ;;  %v2460_v59 = vadd.f32 %v2459_v5, %v2234_v32 }
 0x29c   : > { %2622 = vst [vmem:[%s5140_s8 + $0xc8] sm:$0xff] %v2465_v3 }
 0x29d   : > { %2621 = vst [vmem:[%s5140_s8 + $0xc0] sm:$0xff] %v2460_v59  ;;  %v3072_v55 = vpop.f32.mrb[138].mxu0 }
 0x29e   : > { %v2249_v14 = vpop.f32.mrb[134].mxu1  ;;  %v2469_v31 = vpop.f32.mrb[139].mxu0 }
 0x29f   : > { %v2475_v27 = vadd.f32 %v3072_v55, %v2249_v14  ;;  %v2251_v24 = vpop.f32.mrb[135].mxu1  ;;  %v2470_v44 = vadd.f32 %v2469_v31, %v2244_v4 }
 0x2a1   : > { %2624 = vst [vmem:[%s5140_s8 + $0xd8] sm:$0xff] %v2475_v27  ;;  %2623 = vst [vmem:[%s5140_s8 + $0xd0] sm:$0xff] %v2470_v44 }
 0x2a2   : > { %v2254_v25 = vpop.f32.mrb[136].mxu1 }
 0x2a3   : > { %v2256_v43 = vpop.f32.mrb[137].mxu1  ;;  %v3075_v18 = vpop.f32.mrb[140].mxu0 }
 0x2a4   : > { %v2479_v37 = vpop.f32.mrb[141].mxu0 }
 0x2a5   : > { %v2480_v35 = vadd.f32 %v2479_v37, %v2254_v25 }
 0x2a6   : > { %v2259_v0 = vpop.f32.mrb[138].mxu1 }
 0x2a7   : > { %v2485_v34 = vadd.f32 %v3075_v18, %v2259_v0  ;;  %v2261_v9 = vpop.f32.mrb[139].mxu1  ;;  %2625 = vst [vmem:[%s5140_s8 + $0xe0] sm:$0xff] %v2480_v35 }
 0x2a9   : > { %2626 = vst [vmem:[%s5140_s8 + $0xe8] sm:$0xff] %v2485_v34 }
 0x2aa   : > { %v2264_v16 = vpop.f32.mrb[140].mxu1 }
 0x2ab   : > { %v2266_v1 = vpop.f32.mrb[141].mxu1  ;;  %v3078_v20 = vpop.f32.mrb[142].mxu0 }
 0x2ac   : > { %v2489_v12 = vpop.f32.mrb[143].mxu0 }
 0x2ad   : > { %v2490_v56 = vadd.f32 %v2489_v12, %v2264_v16 }
 0x2ae   : > { %v2269_v52 = vpop.f32.mrb[142].mxu1 }
 0x2af   : > { %v2495_v54 = vadd.f32 %v3078_v20, %v2269_v52  ;;  %v2271_v60 = vpop.f32.mrb[143].mxu1  ;;  %2627 = vst [vmem:[%s5140_s8 + $0xf0] sm:$0xff] %v2490_v56 }
 0x2b1   : > { %2628 = vst [vmem:[%s5140_s8 + $0xf8] sm:$0xff] %v2495_v54 }
 0x2b2   : > { %3657 = shalt.err (!%p3654_p5)
}
 0x2b3   : > { %s3658_s27 = scalar_lea.hbm %s5177_s18, 4096  ;;  %s3662_s30 = scalar_lea.hbm %s5234_s3, 16384 }
 0x2b4   : > { %p3659_p6 = scmp.ne.s32.totalorder %s5177_s18, %s3658_s27  ;;  %p3663_p10 = scmp.lt.u32.totalorder %s5177_s18, %s5234_s3 }
 0x2b5   : > { %p3664_p11 = scmp.lt.u32.totalorder %s3662_s30, %s3658_s27  ;;  %p3666_p13 = scmp.lt.u32.totalorder %s3658_s27, %s5177_s18 }
 0x2b6   : > { %p3660_p7 = pnand %p3659_p6, %p3789_p4 }
 0x2b7   : > { %p3665_p12 = por %p3664_p11, %p3663_p10 }
 0x2b8   : > { %p3661_p9 = pneg %p3660_p7 }
 0x2b9   : > { %p3667_p0 = por %p3666_p13, %p3665_p12 }
 0x2bb   : > { %p3668_p1 = pnand %p3667_p0, %p3661_p9 }
 0x2bd   : > { %3671 = shalt.err (!%p3668_p1)
}
 0x2be   : > { %s3727_s7 = smov 128   ;;  %s3728_s8 = smov 8  }
 0x2bf   : > { %3201 = dma.vmem_to_hbm [thread:$0]  (%p3789_p4), %s5179_s11, 4096, %s5177_s18, %s5185_s15, %s3727_s7, %s3727_s7, %s3728_s8  }
 0x2c0 PF: > { %p3207_p2 = scmp.ge.s32.totalorder %s3722_s17, 2  ;;  %s2658_s9 = sand.u32 1, %s3702_s12  }
 0x2c1   : > { %s2659_s5 = scalar_lea.sflag [#allocation4], %s2658_s9 }
 0x2c2   : > { %p3204_p3 = pnand %p3207_p2, %p3796_p8 }
 0x2c4   : > { %3697 = dma.done.wait (!%p3204_p3), %s2659_s5, 4096  }
 0x2c5   : > { %3699 = vsyncadd (!%p3204_p3), %s2659_s5, 4294963200  ;;  %s16_s17 = sadd.s32 1, %s3722_s17   ;;  %s5439_s12 = smov %s3706_s13 }
 0x2c6   : > { %p13_p5 = scmp.ge.s32.totalorder %s16_s17, 6   ;;  %s5440_s13 = smov %s3710_s14 }
 0x2c7   : > { %s5441_s14 = smov %s3802_s25  ;;  %s5442_s15 = smov %s3718_s16 }
 0x2c8   : > { %s5443_s16 = smov %s5445_s20  ;;  %15 = sbr.rel (!%p13_p5) target bundleno = 4 (0x4), region = 81 }
 0x2cf   :  { %2664 = vsyncpa [#allocation4], 1 }
 0x2d0   :  { %2666 = vsyncpa [#allocation4 + $0x1], 1 }

</bundles_post_ra>
